<compile_context>
chip_gen: v7x
topology: tpu7x:2x2x1
jax: 0.10.0
libtpu: 0.0.40
codegen_flags: <defaults>
</compile_context>

<pallas_src>
import jax
import jax.numpy as jnp
from jax.experimental import pallas as pl
from jax.experimental.pallas import tpu as pltpu


# ----------------------------- RoPE helpers ---------------------------------

def rope_tables(seq_len, latent_size, rope_base=10000):
    """(S, D) cos / signed-sin tables in the even/odd-permuted (rotate-half) basis."""
    pos = jnp.arange(seq_len, dtype=jnp.float32)[:, None]            # (S, 1)
    i = jnp.arange(latent_size // 2, dtype=jnp.float32)[None, :]     # (1, D/2)
    theta = pos * (rope_base ** (-2.0 * i / latent_size))            # (S, D/2)
    cos, sin = jnp.cos(theta), jnp.sin(theta)
    cos_cat = jnp.concatenate([cos, cos], axis=-1)                   # (S, D)
    sin_cat = jnp.concatenate([sin, -sin], axis=-1)                  # (S, D)
    return cos_cat, sin_cat


def get_rotary_matrix(context_length, latent_size, rope_base=10000):
    """Dense per-position rotary matrix (reference only)."""
    pos = jnp.arange(context_length, dtype=jnp.float32)[:, None]
    i = jnp.arange(latent_size // 2, dtype=jnp.float32)[None, :]
    theta = pos * (rope_base ** (-2.0 * i / latent_size))
    cos, sin = jnp.cos(theta), jnp.sin(theta)
    rot = jnp.zeros((context_length, latent_size, latent_size), jnp.float32)
    ev = 2 * jnp.arange(latent_size // 2)
    rot = rot.at[:, ev, ev].set(cos)
    rot = rot.at[:, ev, ev + 1].set(-sin)
    rot = rot.at[:, ev + 1, ev].set(sin)
    rot = rot.at[:, ev + 1, ev + 1].set(cos)
    return rot


# ----------------------------- param prep -----------------------------------

def prepare_params(params, latent_size):
    """One-time prep: permute Q/K columns to rotate-half basis, fold 1/sqrt(D)
    into Q, fuse QKV weights of all heads into (D, H*3D), cast weights to bf16."""
    D = latent_size
    H = params["wq_t"].shape[0]
    perm = jnp.concatenate([jnp.arange(0, D, 2), jnp.arange(1, D, 2)])
    scale = float(D) ** -0.5

    wq = params["wq_t"][:, :, perm] * scale        # fold softmax scale into Q
    bq = params["bq"][:, :, perm] * scale
    wk = params["wk_t"][:, :, perm]
    bk = params["bk"][:, :, perm]

    # Per-head contiguous [Wq | Wk | Wv] blocks, heads laid out along columns.
    w_per_head = jnp.concatenate([wq, wk, params["wv_t"]], axis=-1)    # (H, D, 3D)
    b_per_head = jnp.concatenate([bq, bk, params["bv"]], axis=-1)      # (H, 1, 3D)
    w_qkv = jnp.transpose(w_per_head, (1, 0, 2)).reshape(D, H * 3 * D)  # (D, H*3D)
    b_qkv = jnp.transpose(b_per_head, (1, 0, 2)).reshape(1, H * 3 * D)  # (1, H*3D)

    return {
        "w_qkv": w_qkv.astype(jnp.bfloat16),
        "b_qkv": b_qkv.astype(jnp.float32),
        "w_fcn": params["w_fcn_t"].astype(jnp.bfloat16),               # (H*D, D)
        "b_fcn": params["b_fcn"].astype(jnp.float32),                  # (1, D)
    }


# ------------------------------ kernel ---------------------------------------

def _mha_fused_kernel(x_ref, wqkv_ref, bqkv_ref, cos_ref, sin_ref,
                      wfcn_ref, bfcn_ref, o_ref):
    S, D = x_ref.shape[1], x_ref.shape[2]
    H = wqkv_ref.shape[1] // (3 * D)

    x = x_ref[0]                                                       # (S, D) bf16

    # Fused QKV projection for all heads: one wide bf16 MXU push
    # (N = H*3D = 6*256 on v6e/v7x), f32 accumulation.
    qkv = jnp.dot(x, wqkv_ref[...],
                  preferred_element_type=jnp.float32) + bqkv_ref[...]  # (S, H*3D)

    cos = cos_ref[...]                                                 # (S, D)
    sin = sin_ref[...]                                                 # (S, D)

    # Causal mask hoisted out of the head loop.
    row = jax.lax.broadcasted_iota(jnp.int32, (S, S), 0)
    col = jax.lax.broadcasted_iota(jnp.int32, (S, S), 1)
    causal = col > row

    heads = []
    for h in range(H):                       # static unroll (H known at trace time)
        base = 3 * D * h                     # 128-lane-aligned static slices
        q = qkv[:, base:base + D]
        k = qkv[:, base + D:base + 2 * D]
        v = qkv[:, base + 2 * D:base + 3 * D]

        # RoPE (rotate-half): 2 VPU muls + add per element; half-width lane
        # roll on the XLU slot.  1/sqrt(D) already folded into Wq/bq.
        q = q * cos + pltpu.roll(q, D // 2, axis=1) * sin
        k = k * cos + pltpu.roll(k, D // 2, axis=1) * sin

        # Scores (bf16 operands, f32 accumulation) + causal mask.
        s = jax.lax.dot_general(q.astype(jnp.bfloat16), k.astype(jnp.bfloat16),
                                (((1,), (1,)), ((), ())),
                                preferred_element_type=jnp.float32)    # (S, S)
        s = jnp.where(causal, -1e30, s)

        # Softmax in f32 on the VPU; reciprocal on the EUP slot.
        m = jnp.max(s, axis=-1, keepdims=True)
        p = jnp.exp(s - m)
        p = p * pl.reciprocal(jnp.sum(p, axis=-1, keepdims=True), approx=True)

        heads.append(jnp.dot(p.astype(jnp.bfloat16), v.astype(jnp.bfloat16),
                             preferred_element_type=jnp.float32)
                     .astype(jnp.bfloat16))                            # (S, D)

    # Single fused output projection over all heads: K = H*D (= 2*256).
    heads_cat = jnp.concatenate(heads, axis=-1)                        # (S, H*D) bf16
    out = jnp.dot(heads_cat, wfcn_ref[...],
                  preferred_element_type=jnp.float32) + bfcn_ref[...]  # (S, D)
    o_ref[0] = out


# ------------------------------ wrapper ---------------------------------------

def _vmem_limit_bytes(S, D, H):
    s8 = max(S, 8)
    s16 = max(S, 16)
    blk = 0
    blk += s16 * D * 2              # x tile (bf16, sublane-padded)
    blk += D * 3 * H * D * 2        # fused W_qkv (bf16)
    blk += 8 * 3 * H * D * 4        # b_qkv (f32, padded to 8 sublanes)
    blk += 2 * s8 * D * 4           # cos + sin tables (f32)
    blk += H * D * D * 2            # W_fcn (bf16)
    blk += 8 * D * 4                # b_fcn (padded)
    blk += s8 * D * 4               # output tile (f32)
    # double-buffering + headroom for compiler-internal scratch
    return int(2 * blk) + (4 << 20)


def _cost_estimate(B, S, D, H):
    flops = B * (2 * S * D * (3 * H * D)          # fused QKV projection
                 + H * (2 * S * S * D)            # Q K^T
                 + H * (2 * S * S * D)            # P V
                 + 2 * S * (H * D) * D)           # output projection
    transcendentals = B * H * S * S               # exp in softmax
    bytes_accessed = (B * S * D * 2               # x (bf16)
                      + D * 3 * H * D * 2 + 3 * H * D * 4   # W_qkv, b_qkv
                      + 2 * S * D * 4                        # cos, sin
                      + H * D * D * 2 + D * 4                # W_fcn, b_fcn
                      + B * S * D * 4)                       # output (f32)
    return pl.CostEstimate(flops=flops, transcendentals=transcendentals,
                           bytes_accessed=bytes_accessed)


def multi_head_attention(x, prep, cos, sin):
    B, S, D = x.shape
    H = prep["w_qkv"].shape[1] // (3 * D)
    x_bf16 = x.astype(jnp.bfloat16)              # halve x DMA bytes
    return pl.pallas_call(
        _mha_fused_kernel,
        out_shape=jax.ShapeDtypeStruct((B, S, D), jnp.float32),
        grid=(B,),
        in_specs=[
            pl.BlockSpec((1, S, D), lambda b: (b, 0, 0)),          # x (bf16)
            pl.BlockSpec((D, 3 * H * D), lambda b: (0, 0)),        # fused W_qkv (resident)
            pl.BlockSpec((1, 3 * H * D), lambda b: (0, 0)),        # fused b_qkv
            pl.BlockSpec((S, D), lambda b: (0, 0)),                # cos table
            pl.BlockSpec((S, D), lambda b: (0, 0)),                # signed sin table
            pl.BlockSpec((H * D, D), lambda b: (0, 0)),            # W_fcn (resident)
            pl.BlockSpec((1, D), lambda b: (0, 0)),                # b_fcn
        ],
        out_specs=pl.BlockSpec((1, S, D), lambda b: (b, 0, 0)),
        compiler_params=pltpu.CompilerParams(
            dimension_semantics=("parallel",),                     # v7x: 1 batch per TC
            vmem_limit_bytes=_vmem_limit_bytes(S, D, H)),
        cost_estimate=_cost_estimate(B, S, D, H),
    )(x_bf16, prep["w_qkv"], prep["b_qkv"], cos, sin,
      prep["w_fcn"], prep["b_fcn"])


# ------------------------------ reference -------------------------------------

def reference_mha(x, params, rot_full):
    B, S, D = x.shape
    H = params["wq_t"].shape[0]
    rot = rot_full[:S]
    heads = []
    for h in range(H):
        q = x @ params["wq_t"][h] + params["bq"][h]
        k = x @ params["wk_t"][h] + params["bk"][h]
        v = x @ params["wv_t"][h] + params["bv"][h]
        q = jnp.einsum("bsd,sde->bse", q, rot)
        k = jnp.einsum("bsd,sde->bse", k, rot)
        s = jnp.einsum("bid,bjd->bij", q, k) * (float(D) ** -0.5)
        mask = jnp.triu(jnp.ones((S, S), dtype=bool), k=1)
        s = jnp.where(mask[None], -jnp.inf, s)
        p = jax.nn.softmax(s, axis=-1)
        heads.append(jnp.einsum("bij,bjd->bid", p, v))
    cat = jnp.concatenate(heads, axis=-1)
    return cat @ params["w_fcn_t"] + params["b_fcn"]


# ------------------------------ main ------------------------------------------

if __name__ == "__main__":
    B, S, D, H = 2, 8, 128, 4
    context_length = 16

    key = jax.random.PRNGKey(0)
    ks = jax.random.split(key, 9)
    params = {
        "wq_t": jax.random.normal(ks[0], (H, D, D), jnp.float32) * 0.05,
        "wk_t": jax.random.normal(ks[1], (H, D, D), jnp.float32) * 0.05,
        "wv_t": jax.random.normal(ks[2], (H, D, D), jnp.float32) * 0.05,
        "bq": jax.random.normal(ks[3], (H, 1, D), jnp.float32) * 0.02,
        "bk": jax.random.normal(ks[4], (H, 1, D), jnp.float32) * 0.02,
        "bv": jax.random.normal(ks[5], (H, 1, D), jnp.float32) * 0.02,
        "w_fcn_t": jax.random.normal(ks[6], (H * D, D), jnp.float32) * 0.05,
        "b_fcn": jax.random.normal(ks[7], (1, D), jnp.float32) * 0.02,
    }
    x = jax.random.normal(ks[8], (B, S, D), jnp.float32)

    # One-time, wrapper-side prep (not per-call work).
    prep = prepare_params(params, D)
    cos, sin = rope_tables(S, D)   # positions 0..S-1 == rotary_matrix[:S]

    out = multi_head_attention(x, prep, cos, sin)
    out = jax.block_until_ready(out)

    rot_full = get_rotary_matrix(context_length, D)
    ref = reference_mha(x, params, rot_full)

    if out.shape != (B, S, D):
        raise AssertionError(f"bad output shape {out.shape}")
    if not bool(jnp.allclose(out, ref, atol=2e-2, rtol=2e-2)):
        err = float(jnp.max(jnp.abs(out - ref)))
        raise AssertionError(f"Pallas output does not match reference (max abs err {err})")
    print("KERNEL_OK")
</pallas_src>

<mosaic_0001>
module attributes {stable_mosaic.version = 11 : i64} {
  func.func @_mha_fused_kernel(%arg0: i32, %arg1: memref<1x8x128xbf16, #tpu.memory_space<vmem>>, %arg2: memref<128x1536xbf16, #tpu.memory_space<vmem>>, %arg3: memref<1x1536xf32, #tpu.memory_space<vmem>>, %arg4: memref<8x128xf32, #tpu.memory_space<vmem>>, %arg5: memref<8x128xf32, #tpu.memory_space<vmem>>, %arg6: memref<512x128xbf16, #tpu.memory_space<vmem>>, %arg7: memref<1x128xf32, #tpu.memory_space<vmem>>, %arg8: memref<1x8x128xf32, #tpu.memory_space<vmem>>) attributes {dimension_semantics = [#tpu.dimension_semantics<parallel>], iteration_bounds = array<i64: 2>, scalar_prefetch = 0 : i64, scratch_operands = 0 : i64, tpu.core_type = #tpu.core_type<tc>, window_params = [{transform_indices = @transform_0, window_bounds = array<i64: 1, 8, 128>}, {pipeline_mode = #tpu.pipeline_mode<synchronous>, transform_indices = @transform_1, window_bounds = array<i64: 128, 1536>}, {pipeline_mode = #tpu.pipeline_mode<synchronous>, transform_indices = @transform_2, window_bounds = array<i64: 1, 1536>}, {pipeline_mode = #tpu.pipeline_mode<synchronous>, transform_indices = @transform_3, window_bounds = array<i64: 8, 128>}, {pipeline_mode = #tpu.pipeline_mode<synchronous>, transform_indices = @transform_4, window_bounds = array<i64: 8, 128>}, {pipeline_mode = #tpu.pipeline_mode<synchronous>, transform_indices = @transform_5, window_bounds = array<i64: 512, 128>}, {pipeline_mode = #tpu.pipeline_mode<synchronous>, transform_indices = @transform_6, window_bounds = array<i64: 1, 128>}, {transform_indices = @transform_7, window_bounds = array<i64: 1, 8, 128>}]} {
    %c0 = arith.constant 0 : index
    %c0_0 = arith.constant 0 : index
    %c0_1 = arith.constant 0 : index
    %0 = vector.load %arg1[%c0, %c0_0, %c0_1] : memref<1x8x128xbf16, #tpu.memory_space<vmem>>, vector<1x8x128xbf16>
    %1 = vector.shape_cast %0 : vector<1x8x128xbf16> to vector<8x128xbf16>
    %c0_2 = arith.constant 0 : index
    %c0_3 = arith.constant 0 : index
    %2 = vector.load %arg2[%c0_2, %c0_3] : memref<128x1536xbf16, #tpu.memory_space<vmem>>, vector<128x1536xbf16>
    %cst = arith.constant dense<0.000000e+00> : vector<8x1536xf32>
    %3 = tpu.matmul %1, %2, %cst {dimension_numbers = #tpu.dot_dimension_numbers<[1], [0], [0], [1], [0, 0, 1, 1], [], []>} : vector<8x128xbf16>, vector<128x1536xbf16>, vector<8x1536xf32> -> vector<8x1536xf32>
    %c0_4 = arith.constant 0 : index
    %c0_5 = arith.constant 0 : index
    %4 = vector.load %arg3[%c0_4, %c0_5] : memref<1x1536xf32, #tpu.memory_space<vmem>>, vector<1x1536xf32>
    %5 = vector.broadcast %4 : vector<1x1536xf32> to vector<8x1536xf32>
    %6 = arith.addf %3, %5 : vector<8x1536xf32>
    %c0_6 = arith.constant 0 : index
    %c0_7 = arith.constant 0 : index
    %7 = vector.load %arg4[%c0_6, %c0_7] : memref<8x128xf32, #tpu.memory_space<vmem>>, vector<8x128xf32>
    %c0_8 = arith.constant 0 : index
    %c0_9 = arith.constant 0 : index
    %8 = vector.load %arg5[%c0_8, %c0_9] : memref<8x128xf32, #tpu.memory_space<vmem>>, vector<8x128xf32>
    %9 = tpu.iota {dimensions = array<i32: 0>} : vector<8x8xi32>
    %10 = tpu.iota {dimensions = array<i32: 1>} : vector<8x8xi32>
    %11 = arith.cmpi sgt, %10, %9 : vector<8x8xi32>
    %12 = vector.extract_strided_slice %6 {offsets = [0, 0], sizes = [8, 128], strides = [1, 1]} : vector<8x1536xf32> to vector<8x128xf32>
    %13 = vector.extract_strided_slice %6 {offsets = [0, 128], sizes = [8, 128], strides = [1, 1]} : vector<8x1536xf32> to vector<8x128xf32>
    %14 = vector.extract_strided_slice %6 {offsets = [0, 256], sizes = [8, 128], strides = [1, 1]} : vector<8x1536xf32> to vector<8x128xf32>
    %15 = arith.mulf %12, %7 : vector<8x128xf32>
    %c64_i32 = arith.constant 64 : i32
    %16 = tpu.dynamic_rotate %12 by %c64_i32 dim 1 : vector<8x128xf32>, i32 -> vector<8x128xf32>
    %17 = arith.mulf %16, %8 : vector<8x128xf32>
    %18 = arith.addf %15, %17 : vector<8x128xf32>
    %19 = arith.mulf %13, %7 : vector<8x128xf32>
    %c64_i32_10 = arith.constant 64 : i32
    %20 = tpu.dynamic_rotate %13 by %c64_i32_10 dim 1 : vector<8x128xf32>, i32 -> vector<8x128xf32>
    %21 = arith.mulf %20, %8 : vector<8x128xf32>
    %22 = arith.addf %19, %21 : vector<8x128xf32>
    %23 = arith.truncf %18 : vector<8x128xf32> to vector<8x128xbf16>
    %24 = arith.truncf %22 : vector<8x128xf32> to vector<8x128xbf16>
    %cst_11 = arith.constant dense<0.000000e+00> : vector<8x8xf32>
    %25 = tpu.matmul %23, %24, %cst_11 {dimension_numbers = #tpu.dot_dimension_numbers<[1], [1], [0], [0], [0, 0, 1, 0], [], []>} : vector<8x128xbf16>, vector<8x128xbf16>, vector<8x8xf32> -> vector<8x8xf32>
    %cst_12 = arith.constant -1.000000e+30 : f32
    %26 = vector.broadcast %cst_12 : f32 to vector<8x8xf32>
    %27 = arith.select %11, %26, %25 : vector<8x8xi1>, vector<8x8xf32>
    %cst_13 = arith.constant dense<0xFF800000> : vector<8xf32>
    %28 = vector.multi_reduction <maximumf>, %27, %cst_13 [1] : vector<8x8xf32> to vector<8xf32>
    %29 = vector.shape_cast %28 : vector<8xf32> to vector<8x1xf32>
    %30 = vector.broadcast %29 : vector<8x1xf32> to vector<8x8xf32>
    %31 = arith.subf %27, %30 : vector<8x8xf32>
    %32 = math.exp %31 : vector<8x8xf32>
    %cst_14 = arith.constant dense<0.000000e+00> : vector<8xf32>
    %33 = vector.multi_reduction <add>, %32, %cst_14 [1] : vector<8x8xf32> to vector<8xf32>
    %34 = vector.shape_cast %33 : vector<8xf32> to vector<8x1xf32>
    %35 = tpu.reciprocal %34 {approx = true} : vector<8x1xf32> -> vector<8x1xf32>
    %36 = vector.broadcast %35 : vector<8x1xf32> to vector<8x8xf32>
    %37 = arith.mulf %32, %36 : vector<8x8xf32>
    %38 = arith.truncf %37 : vector<8x8xf32> to vector<8x8xbf16>
    %39 = arith.truncf %14 : vector<8x128xf32> to vector<8x128xbf16>
    %cst_15 = arith.constant dense<0.000000e+00> : vector<8x128xf32>
    %40 = tpu.matmul %38, %39, %cst_15 {dimension_numbers = #tpu.dot_dimension_numbers<[1], [0], [0], [1], [0, 0, 1, 1], [], []>} : vector<8x8xbf16>, vector<8x128xbf16>, vector<8x128xf32> -> vector<8x128xf32>
    %41 = arith.truncf %40 : vector<8x128xf32> to vector<8x128xbf16>
    %42 = vector.extract_strided_slice %6 {offsets = [0, 384], sizes = [8, 128], strides = [1, 1]} : vector<8x1536xf32> to vector<8x128xf32>
    %43 = vector.extract_strided_slice %6 {offsets = [0, 512], sizes = [8, 128], strides = [1, 1]} : vector<8x1536xf32> to vector<8x128xf32>
    %44 = vector.extract_strided_slice %6 {offsets = [0, 640], sizes = [8, 128], strides = [1, 1]} : vector<8x1536xf32> to vector<8x128xf32>
    %45 = arith.mulf %42, %7 : vector<8x128xf32>
    %c64_i32_16 = arith.constant 64 : i32
    %46 = tpu.dynamic_rotate %42 by %c64_i32_16 dim 1 : vector<8x128xf32>, i32 -> vector<8x128xf32>
    %47 = arith.mulf %46, %8 : vector<8x128xf32>
    %48 = arith.addf %45, %47 : vector<8x128xf32>
    %49 = arith.mulf %43, %7 : vector<8x128xf32>
    %c64_i32_17 = arith.constant 64 : i32
    %50 = tpu.dynamic_rotate %43 by %c64_i32_17 dim 1 : vector<8x128xf32>, i32 -> vector<8x128xf32>
    %51 = arith.mulf %50, %8 : vector<8x128xf32>
    %52 = arith.addf %49, %51 : vector<8x128xf32>
    %53 = arith.truncf %48 : vector<8x128xf32> to vector<8x128xbf16>
    %54 = arith.truncf %52 : vector<8x128xf32> to vector<8x128xbf16>
    %cst_18 = arith.constant dense<0.000000e+00> : vector<8x8xf32>
    %55 = tpu.matmul %53, %54, %cst_18 {dimension_numbers = #tpu.dot_dimension_numbers<[1], [1], [0], [0], [0, 0, 1, 0], [], []>} : vector<8x128xbf16>, vector<8x128xbf16>, vector<8x8xf32> -> vector<8x8xf32>
    %cst_19 = arith.constant -1.000000e+30 : f32
    %56 = vector.broadcast %cst_19 : f32 to vector<8x8xf32>
    %57 = arith.select %11, %56, %55 : vector<8x8xi1>, vector<8x8xf32>
    %cst_20 = arith.constant dense<0xFF800000> : vector<8xf32>
    %58 = vector.multi_reduction <maximumf>, %57, %cst_20 [1] : vector<8x8xf32> to vector<8xf32>
    %59 = vector.shape_cast %58 : vector<8xf32> to vector<8x1xf32>
    %60 = vector.broadcast %59 : vector<8x1xf32> to vector<8x8xf32>
    %61 = arith.subf %57, %60 : vector<8x8xf32>
    %62 = math.exp %61 : vector<8x8xf32>
    %cst_21 = arith.constant dense<0.000000e+00> : vector<8xf32>
    %63 = vector.multi_reduction <add>, %62, %cst_21 [1] : vector<8x8xf32> to vector<8xf32>
    %64 = vector.shape_cast %63 : vector<8xf32> to vector<8x1xf32>
    %65 = tpu.reciprocal %64 {approx = true} : vector<8x1xf32> -> vector<8x1xf32>
    %66 = vector.broadcast %65 : vector<8x1xf32> to vector<8x8xf32>
    %67 = arith.mulf %62, %66 : vector<8x8xf32>
    %68 = arith.truncf %67 : vector<8x8xf32> to vector<8x8xbf16>
    %69 = arith.truncf %44 : vector<8x128xf32> to vector<8x128xbf16>
    %cst_22 = arith.constant dense<0.000000e+00> : vector<8x128xf32>
    %70 = tpu.matmul %68, %69, %cst_22 {dimension_numbers = #tpu.dot_dimension_numbers<[1], [0], [0], [1], [0, 0, 1, 1], [], []>} : vector<8x8xbf16>, vector<8x128xbf16>, vector<8x128xf32> -> vector<8x128xf32>
    %71 = arith.truncf %70 : vector<8x128xf32> to vector<8x128xbf16>
    %72 = vector.extract_strided_slice %6 {offsets = [0, 768], sizes = [8, 128], strides = [1, 1]} : vector<8x1536xf32> to vector<8x128xf32>
    %73 = vector.extract_strided_slice %6 {offsets = [0, 896], sizes = [8, 128], strides = [1, 1]} : vector<8x1536xf32> to vector<8x128xf32>
    %74 = vector.extract_strided_slice %6 {offsets = [0, 1024], sizes = [8, 128], strides = [1, 1]} : vector<8x1536xf32> to vector<8x128xf32>
    %75 = arith.mulf %72, %7 : vector<8x128xf32>
    %c64_i32_23 = arith.constant 64 : i32
    %76 = tpu.dynamic_rotate %72 by %c64_i32_23 dim 1 : vector<8x128xf32>, i32 -> vector<8x128xf32>
    %77 = arith.mulf %76, %8 : vector<8x128xf32>
    %78 = arith.addf %75, %77 : vector<8x128xf32>
    %79 = arith.mulf %73, %7 : vector<8x128xf32>
    %c64_i32_24 = arith.constant 64 : i32
    %80 = tpu.dynamic_rotate %73 by %c64_i32_24 dim 1 : vector<8x128xf32>, i32 -> vector<8x128xf32>
    %81 = arith.mulf %80, %8 : vector<8x128xf32>
    %82 = arith.addf %79, %81 : vector<8x128xf32>
    %83 = arith.truncf %78 : vector<8x128xf32> to vector<8x128xbf16>
    %84 = arith.truncf %82 : vector<8x128xf32> to vector<8x128xbf16>
    %cst_25 = arith.constant dense<0.000000e+00> : vector<8x8xf32>
    %85 = tpu.matmul %83, %84, %cst_25 {dimension_numbers = #tpu.dot_dimension_numbers<[1], [1], [0], [0], [0, 0, 1, 0], [], []>} : vector<8x128xbf16>, vector<8x128xbf16>, vector<8x8xf32> -> vector<8x8xf32>
    %cst_26 = arith.constant -1.000000e+30 : f32
    %86 = vector.broadcast %cst_26 : f32 to vector<8x8xf32>
    %87 = arith.select %11, %86, %85 : vector<8x8xi1>, vector<8x8xf32>
    %cst_27 = arith.constant dense<0xFF800000> : vector<8xf32>
    %88 = vector.multi_reduction <maximumf>, %87, %cst_27 [1] : vector<8x8xf32> to vector<8xf32>
    %89 = vector.shape_cast %88 : vector<8xf32> to vector<8x1xf32>
    %90 = vector.broadcast %89 : vector<8x1xf32> to vector<8x8xf32>
    %91 = arith.subf %87, %90 : vector<8x8xf32>
    %92 = math.exp %91 : vector<8x8xf32>
    %cst_28 = arith.constant dense<0.000000e+00> : vector<8xf32>
    %93 = vector.multi_reduction <add>, %92, %cst_28 [1] : vector<8x8xf32> to vector<8xf32>
    %94 = vector.shape_cast %93 : vector<8xf32> to vector<8x1xf32>
    %95 = tpu.reciprocal %94 {approx = true} : vector<8x1xf32> -> vector<8x1xf32>
    %96 = vector.broadcast %95 : vector<8x1xf32> to vector<8x8xf32>
    %97 = arith.mulf %92, %96 : vector<8x8xf32>
    %98 = arith.truncf %97 : vector<8x8xf32> to vector<8x8xbf16>
    %99 = arith.truncf %74 : vector<8x128xf32> to vector<8x128xbf16>
    %cst_29 = arith.constant dense<0.000000e+00> : vector<8x128xf32>
    %100 = tpu.matmul %98, %99, %cst_29 {dimension_numbers = #tpu.dot_dimension_numbers<[1], [0], [0], [1], [0, 0, 1, 1], [], []>} : vector<8x8xbf16>, vector<8x128xbf16>, vector<8x128xf32> -> vector<8x128xf32>
    %101 = arith.truncf %100 : vector<8x128xf32> to vector<8x128xbf16>
    %102 = vector.extract_strided_slice %6 {offsets = [0, 1152], sizes = [8, 128], strides = [1, 1]} : vector<8x1536xf32> to vector<8x128xf32>
    %103 = vector.extract_strided_slice %6 {offsets = [0, 1280], sizes = [8, 128], strides = [1, 1]} : vector<8x1536xf32> to vector<8x128xf32>
    %104 = vector.extract_strided_slice %6 {offsets = [0, 1408], sizes = [8, 128], strides = [1, 1]} : vector<8x1536xf32> to vector<8x128xf32>
    %105 = arith.mulf %102, %7 : vector<8x128xf32>
    %c64_i32_30 = arith.constant 64 : i32
    %106 = tpu.dynamic_rotate %102 by %c64_i32_30 dim 1 : vector<8x128xf32>, i32 -> vector<8x128xf32>
    %107 = arith.mulf %106, %8 : vector<8x128xf32>
    %108 = arith.addf %105, %107 : vector<8x128xf32>
    %109 = arith.mulf %103, %7 : vector<8x128xf32>
    %c64_i32_31 = arith.constant 64 : i32
    %110 = tpu.dynamic_rotate %103 by %c64_i32_31 dim 1 : vector<8x128xf32>, i32 -> vector<8x128xf32>
    %111 = arith.mulf %110, %8 : vector<8x128xf32>
    %112 = arith.addf %109, %111 : vector<8x128xf32>
    %113 = arith.truncf %108 : vector<8x128xf32> to vector<8x128xbf16>
    %114 = arith.truncf %112 : vector<8x128xf32> to vector<8x128xbf16>
    %cst_32 = arith.constant dense<0.000000e+00> : vector<8x8xf32>
    %115 = tpu.matmul %113, %114, %cst_32 {dimension_numbers = #tpu.dot_dimension_numbers<[1], [1], [0], [0], [0, 0, 1, 0], [], []>} : vector<8x128xbf16>, vector<8x128xbf16>, vector<8x8xf32> -> vector<8x8xf32>
    %cst_33 = arith.constant -1.000000e+30 : f32
    %116 = vector.broadcast %cst_33 : f32 to vector<8x8xf32>
    %117 = arith.select %11, %116, %115 : vector<8x8xi1>, vector<8x8xf32>
    %cst_34 = arith.constant dense<0xFF800000> : vector<8xf32>
    %118 = vector.multi_reduction <maximumf>, %117, %cst_34 [1] : vector<8x8xf32> to vector<8xf32>
    %119 = vector.shape_cast %118 : vector<8xf32> to vector<8x1xf32>
    %120 = vector.broadcast %119 : vector<8x1xf32> to vector<8x8xf32>
    %121 = arith.subf %117, %120 : vector<8x8xf32>
    %122 = math.exp %121 : vector<8x8xf32>
    %cst_35 = arith.constant dense<0.000000e+00> : vector<8xf32>
    %123 = vector.multi_reduction <add>, %122, %cst_35 [1] : vector<8x8xf32> to vector<8xf32>
    %124 = vector.shape_cast %123 : vector<8xf32> to vector<8x1xf32>
    %125 = tpu.reciprocal %124 {approx = true} : vector<8x1xf32> -> vector<8x1xf32>
    %126 = vector.broadcast %125 : vector<8x1xf32> to vector<8x8xf32>
    %127 = arith.mulf %122, %126 : vector<8x8xf32>
    %128 = arith.truncf %127 : vector<8x8xf32> to vector<8x8xbf16>
    %129 = arith.truncf %104 : vector<8x128xf32> to vector<8x128xbf16>
    %cst_36 = arith.constant dense<0.000000e+00> : vector<8x128xf32>
    %130 = tpu.matmul %128, %129, %cst_36 {dimension_numbers = #tpu.dot_dimension_numbers<[1], [0], [0], [1], [0, 0, 1, 1], [], []>} : vector<8x8xbf16>, vector<8x128xbf16>, vector<8x128xf32> -> vector<8x128xf32>
    %131 = arith.truncf %130 : vector<8x128xf32> to vector<8x128xbf16>
    %132 = tpu.concatenate %41, %71, %101, %131 in 1 : vector<8x128xbf16>, vector<8x128xbf16>, vector<8x128xbf16>, vector<8x128xbf16> -> vector<8x512xbf16>
    %c0_37 = arith.constant 0 : index
    %c0_38 = arith.constant 0 : index
    %133 = vector.load %arg6[%c0_37, %c0_38] : memref<512x128xbf16, #tpu.memory_space<vmem>>, vector<512x128xbf16>
    %cst_39 = arith.constant dense<0.000000e+00> : vector<8x128xf32>
    %134 = tpu.matmul %132, %133, %cst_39 {dimension_numbers = #tpu.dot_dimension_numbers<[1], [0], [0], [1], [0, 0, 1, 1], [], []>} : vector<8x512xbf16>, vector<512x128xbf16>, vector<8x128xf32> -> vector<8x128xf32>
    %c0_40 = arith.constant 0 : index
    %c0_41 = arith.constant 0 : index
    %135 = vector.load %arg7[%c0_40, %c0_41] : memref<1x128xf32, #tpu.memory_space<vmem>>, vector<1x128xf32>
    %136 = vector.broadcast %135 : vector<1x128xf32> to vector<8x128xf32>
    %137 = arith.addf %134, %136 : vector<8x128xf32>
    %c0_42 = arith.constant 0 : index
    %c0_43 = arith.constant 0 : index
    %c0_44 = arith.constant 0 : index
    %138 = vector.load %arg8[%c0_42, %c0_43, %c0_44] : memref<1x8x128xf32, #tpu.memory_space<vmem>>, vector<1x8x128xf32>
    %139 = vector.shape_cast %138 : vector<1x8x128xf32> to vector<8x128xf32>
    %140 = vector.shape_cast %137 : vector<8x128xf32> to vector<1x8x128xf32>
    tpu.vector_store %arg8[%c0_42, %c0_43, %c0_44], %140 {strides = array<i32>} : memref<1x8x128xf32, #tpu.memory_space<vmem>>, vector<1x8x128xf32>,
    return
  }
  func.func @transform_0(%arg0: i32) -> (i32, i32, i32) {
    %c0_i32 = arith.constant 0 : i32
    %c0_i32_0 = arith.constant 0 : i32
    %c0_i32_1 = arith.constant 0 : i32
    return %arg0, %c0_i32, %c0_i32_0 : i32, i32, i32
  }
  func.func @transform_1(%arg0: i32) -> (i32, i32) {
    %c0_i32 = arith.constant 0 : i32
    %c0_i32_0 = arith.constant 0 : i32
    %c0_i32_1 = arith.constant 0 : i32
    return %c0_i32, %c0_i32_0 : i32, i32
  }
  func.func @transform_2(%arg0: i32) -> (i32, i32) {
    %c0_i32 = arith.constant 0 : i32
    %c0_i32_0 = arith.constant 0 : i32
    %c0_i32_1 = arith.constant 0 : i32
    return %c0_i32, %c0_i32_0 : i32, i32
  }
  func.func @transform_3(%arg0: i32) -> (i32, i32) {
    %c0_i32 = arith.constant 0 : i32
    %c0_i32_0 = arith.constant 0 : i32
    %c0_i32_1 = arith.constant 0 : i32
    return %c0_i32, %c0_i32_0 : i32, i32
  }
  func.func @transform_4(%arg0: i32) -> (i32, i32) {
    %c0_i32 = arith.constant 0 : i32
    %c0_i32_0 = arith.constant 0 : i32
    %c0_i32_1 = arith.constant 0 : i32
    return %c0_i32, %c0_i32_0 : i32, i32
  }
  func.func @transform_5(%arg0: i32) -> (i32, i32) {
    %c0_i32 = arith.constant 0 : i32
    %c0_i32_0 = arith.constant 0 : i32
    %c0_i32_1 = arith.constant 0 : i32
    return %c0_i32, %c0_i32_0 : i32, i32
  }
  func.func @transform_6(%arg0: i32) -> (i32, i32) {
    %c0_i32 = arith.constant 0 : i32
    %c0_i32_0 = arith.constant 0 : i32
    %c0_i32_1 = arith.constant 0 : i32
    return %c0_i32, %c0_i32_0 : i32, i32
  }
  func.func @transform_7(%arg0: i32) -> (i32, i32, i32) {
    %c0_i32 = arith.constant 0 : i32
    %c0_i32_0 = arith.constant 0 : i32
    %c0_i32_1 = arith.constant 0 : i32
    return %arg0, %c0_i32, %c0_i32_0 : i32, i32, i32
  }
}

</mosaic_0001>

<bundles_post_ra>
// kernel: tpu_custom_call.1
= control target key start
LH: loop header
LB: loop body
LE: loop exit
PB: predicated region body
PF: predicated region fallthrough
CT: control target
= control target key end

     0   :  { %12 = vsyncpa [#allocation3], 0  ;;  %s3380_s0 = inlined_call_operand.hbm [shape: bf16[2,8,128], index: 0, kind: input, shape index: {}]   ;;  %s3381_s1 = inlined_call_operand.hbm [shape: bf16[128,1536], index: 1, kind: input, shape index: {}]   ;;  %s3382_s2 = inlined_call_operand.hbm [shape: f32[1,1536], index: 2, kind: input, shape index: {}]   ;;  %s3383_s3 = inlined_call_operand.vmem [shape: f32[8,128], index: 3, kind: input, shape index: {}]   ;;  %s3384_s4 = inlined_call_operand.hbm [shape: f32[8,128], index: 4, kind: input, shape index: {}]   ;;  %s3385_s5 = inlined_call_operand.hbm [shape: bf16[512,128], index: 5, kind: input, shape index: {}]   ;;  %s3386_s6 = inlined_call_operand.vmem [shape: f32[1,128], index: 6, kind: input, shape index: {}]   ;;  %s3387_s7 = inlined_call_operand.hbm [shape: f32[2,8,128], index: 7, kind: output, shape index: {}]  }
   0x1   :  { %14 = vsyncpa [#allocation3 + $0x1], 0 }
   0x2   :  { %15 = vsyncpa [#allocation6], 0 }
   0x3   :  { %16 = vsyncpa [#allocation9], 0 }
   0x4   :  { %17 = vsyncpa [#allocation4], 0 }
   0x5   :  { %19 = vsyncpa [#allocation4 + $0x1], 0  ;;  %s2983_s24 = smov 0   ;;  %s2985_s25 = smov 0  }
   0x6   :  { %s2987_s26 = smov 0   ;;  %s2989_s27 = smov 0  }
   0x7 LB: > { %s2929_s28 = smov [#allocation5]   ;;  %s3004_s30 = sadd.s32 4294967295, %s2927_s27   ;;  %s2927_s27 = sphi %s2989_s27, %s3411_s27   ;;  %s2923_s26 = sphi %s2987_s26, %s3410_s26   ;;  %s2919_s25 = sphi %s2985_s25, %s3409_s25   ;;  %s2915_s24 = sphi %s2983_s24, %s3408_s24  }
   0x8   : > { %s220_s29 = sshll.u32 %s2929_s28, 4  ;;  %p2164_p0 = scmp.ge.s32.totalorder %s2927_s27, 1  ;;  %s3009_s29 = int_to_ptr.vmem [resolvable:$true] %s220_s29 }
   0x9   : > { %p3388_p1 = scmp.eq.s32.totalorder %s3004_s30, 0  ;;  %p208_p2 = scmp.lt.s32.totalorder %s2927_s27, 3 }
   0xa   : > { %s2930_s9 = smov [#allocation8]   ;;  %s2931_s12 = smov [#allocation7]  }
   0xb   : > { %p3011_p3 = pnand %p2164_p0, %p208_p2  ;;  %s248_s10 = sshll.u32 %s2930_s9, 4  ;;  %s3024_s10 = int_to_ptr.vmem [resolvable:$true] %s248_s10 }
   0xc   : > { %s234_s13 = sshll.u32 %s2931_s12, 4  ;;  %s2711_s16 = scalar_lea.hbm %s3381_s1, 12288  ;;  %s3026_s13 = int_to_ptr.vmem [resolvable:$true] %s234_s13 }
   0xd   : > { %s3391_s8 = scalar_select %p3011_p3, 1, 0 }
   0xe   : > { %p2444_p5 = pneg %p3011_p3  ;;  %p2712_p7 = scmp.ne.s32.totalorder %s3381_s1, %s2711_s16 }
   0xf   : > { %p2718_p11 = scmp.lt.u32.totalorder %s2711_s16, %s3381_s1 }
  0x10   : > { %p3020_p6 = pnand %p2444_p5, %p3388_p1 }
  0x12   : > { %p3036_p8 = pneg %p3020_p6 }
  0x14   : > { %p2714_p9 = pnand %p3036_p8, %p2712_p7 }
  0x16   : > { %p2715_p10 = pneg %p2714_p9 }
  0x18   : > { %p2720_p12 = pnand %p2718_p11, %p2715_p10 }
  0x1a   : > { %2723 = shalt.err (!%p2720_p12)
}
  0x1b   : > { %s2724_s22 = scalar_lea.vmem %s3009_s29, 12288  ;;  %p2732_p5 = scmp.lt.s32.totalorder %s3009_s29, %s3009_s29 }
  0x1c   : > { %p2725_p13 = scmp.ne.s32.totalorder %s3009_s29, %s2724_s22  ;;  %p2733_p4 = scmp.lt.s32.totalorder %s2724_s22, %s2724_s22 }
  0x1e   : > { %p2727_p0 = pnand %p2725_p13, %p3036_p8  ;;  %p2734_p7 = por %p2733_p4, %p2732_p5 }
  0x20   : > { %p2728_p2 = pneg %p2727_p0 }
  0x22   : > { %p2735_p9 = pnand %p2734_p7, %p2728_p2 }
  0x24   : > { %2738 = shalt.err (!%p2735_p9)
}
  0x25   : > { %s2932_s23 = smov 768   ;;  %s2933_s28 = smov 48  }
  0x26   : > { %2447 = dma.hbm_to_vmem [thread:$0]  (!%p3020_p6), %s3381_s1, 12288, %s3009_s29, [#allocation6], %s2932_s23, %s2932_s23, %s2933_s28  }
  0x27   : > { %s2739_s16 = scalar_lea.hbm %s3384_s4, 128 }
  0x28   : > { %p2740_p4 = scmp.ne.s32.totalorder %s3384_s4, %s2739_s16  ;;  %p2746_p12 = scmp.lt.u32.totalorder %s2739_s16, %s3384_s4 }
  0x2a   : > { %p2742_p10 = pnand %p2740_p4, %p3036_p8 }
  0x2c   : > { %p2743_p11 = pneg %p2742_p10 }
  0x2e   : > { %p2748_p13 = pnand %p2746_p12, %p2743_p11 }
  0x30   : > { %2751 = shalt.err (!%p2748_p13)
}
  0x31   : > { %s2752_s29 = scalar_lea.vmem %s3024_s10, 128  ;;  %p2760_p7 = scmp.lt.s32.totalorder %s3024_s10, %s3024_s10 }
  0x32   : > { %p2753_p0 = scmp.ne.s32.totalorder %s3024_s10, %s2752_s29  ;;  %p2761_p9 = scmp.lt.s32.totalorder %s2752_s29, %s2752_s29 }
  0x34   : > { %p2755_p2 = pnand %p2753_p0, %p3036_p8  ;;  %p2762_p4 = por %p2761_p9, %p2760_p7 }
  0x36   : > { %p2756_p5 = pneg %p2755_p2 }
  0x38   : > { %p2763_p10 = pnand %p2762_p4, %p2756_p5 }
  0x3a   : > { %2766 = shalt.err (!%p2763_p10)
}
  0x3b   : > { %2453 = dma.hbm_to_vmem [thread:$0]  (!%p3020_p6), %s3384_s4, 128, %s3024_s10, [#allocation9]  }
  0x3c   : > { %s2767_s12 = scalar_lea.hbm %s3382_s2, 192 }
  0x3d   : > { %p2768_p11 = scmp.ne.s32.totalorder %s3382_s2, %s2767_s12  ;;  %p2774_p0 = scmp.lt.u32.totalorder %s2767_s12, %s3382_s2 }
  0x3f   : > { %p2770_p12 = pnand %p2768_p11, %p3036_p8 }
  0x41   : > { %p2771_p13 = pneg %p2770_p12 }
  0x43   : > { %p2776_p2 = pnand %p2774_p0, %p2771_p13 }
  0x45   : > { %2779 = shalt.err (!%p2776_p2)
}
  0x46   : > { %s2780_s10 = scalar_lea.vmem %s3026_s13, 192  ;;  %p2788_p4 = scmp.lt.s32.totalorder %s3026_s13, %s3026_s13 }
  0x47   : > { %p2781_p5 = scmp.ne.s32.totalorder %s3026_s13, %s2780_s10  ;;  %p2789_p10 = scmp.lt.s32.totalorder %s2780_s10, %s2780_s10 }
  0x49   : > { %p2783_p7 = pnand %p2781_p5, %p3036_p8  ;;  %p2790_p11 = por %p2789_p10, %p2788_p4 }
  0x4b   : > { %p2784_p9 = pneg %p2783_p7 }
  0x4d   : > { %p2791_p12 = pnand %p2790_p11, %p2784_p9 }
  0x4f   : > { %2794 = shalt.err (!%p2791_p12)
}
  0x50   : > { %2450 = dma.hbm_to_vmem [thread:$0]  (!%p3020_p6), %s3382_s2, 192, %s3026_s13, [#allocation6]  }
  0x51   : > { %s2934_s21 = smov [#allocation10]   ;;  %s2795_s28 = scalar_lea.hbm %s3385_s5, 4096 }
  0x52   : > { %s258_s29 = sshll.u32 %s2934_s21, 4  ;;  %p2796_p13 = scmp.ne.s32.totalorder %s3385_s5, %s2795_s28  ;;  %s259_s29 = int_to_ptr.vmem [resolvable:$true] %s258_s29 }
  0x53   : > { %p2802_p5 = scmp.lt.u32.totalorder %s2795_s28, %s3385_s5 }
  0x54   : > { %p2798_p0 = pnand %p2796_p13, %p3036_p8 }
  0x56   : > { %p2799_p2 = pneg %p2798_p0 }
  0x58   : > { %p2804_p7 = pnand %p2802_p5, %p2799_p2 }
  0x5a   : > { %2807 = shalt.err (!%p2804_p7)
}
  0x5b   : > { %s2808_s13 = scalar_lea.vmem %s259_s29, 4096  ;;  %p2816_p11 = scmp.lt.s32.totalorder %s259_s29, %s259_s29 }
  0x5c   : > { %p2809_p9 = scmp.ne.s32.totalorder %s259_s29, %s2808_s13  ;;  %p2817_p12 = scmp.lt.s32.totalorder %s2808_s13, %s2808_s13 }
  0x5e   : > { %p2811_p4 = pnand %p2809_p9, %p3036_p8  ;;  %p2818_p1 = por %p2817_p12, %p2816_p11 }
  0x60   : > { %p2812_p10 = pneg %p2811_p4 }
  0x62   : > { %p2819_p3 = pnand %p2818_p1, %p2812_p10 }
  0x64   : > { %2822 = shalt.err (!%p2819_p3)
}
  0x65   : > { %s2935_s16 = smov 64   ;;  %s2936_s19 = smov 4  }
  0x66   : > { %2456 = dma.hbm_to_vmem [thread:$0]  (!%p3020_p6), %s3385_s5, 4096, %s259_s29, [#allocation9], %s2935_s16, %s2935_s16, %s2936_s19  }
  0x67   : > { %s2163_s18 = sadd.s32 4294967294, %s2927_s27   ;;  %s3123_s20 = sadd.s32 1, %s2927_s27  }
  0x68   : > { %s29_s21 = ssub.s32 %s2927_s27, %s3123_s20  ;;  %s32_s22 = sadd.s32 1, %s2923_s26 }
  0x69   : > { %p30_p1 = scmp.eq.s32.totalorder %s29_s21, 0  ;;  %p39_p3 = scmp.ne.s32.totalorder %s2923_s26, %s2919_s25 }
  0x6a   : > { %p40_p8 = scmp.eq.s32.totalorder %s2927_s27, 0  ;;  %p45_p13 = scmp.ne.s32.totalorder %s2919_s25, %s2915_s24 }
  0x6b   : > { %s3134_s23 = scalar_select %p30_p1, %s2923_s26, %s32_s22  }
  0x6c   : > { %p3136_p0 = por %p40_p8, %p39_p3  ;;  %p3395_p2 = scmp.eq.s32.totalorder %s3004_s30, 0 }
  0x6d   : > { %p195_p5 = scmp.eq.s32.totalorder %s3004_s30, 1  ;;  %p201_p7 = scmp.eq.s32.totalorder %s2163_s18, 1 }
  0x6e   : > { %p3142_p6 = por %p3395_p2, %p45_p13  ;;  %p2469_p9 = scmp.lt.s32.totalorder %s2927_s27, 2 }
  0x6f   : > { %s275_s28 = sand.u32 1, %s2923_s26   ;;  %p3149_p4 = por %p195_p5, %p39_p3 }
  0x70   : > { %p3153_p10 = por %p201_p7, %p45_p13  ;;  %s2170_s14 = sshll.u32 %s275_s28, 2 }
  0x71   : > { %s3397_s9 = scalar_select %p3149_p4, 1, 0 }
  0x72   : > { %s3398_s12 = scalar_select %p3153_p10, 1, 0 }
  0x73   : > { %s2171_s15 = sshll.u32 %s2927_s27, 6  ;;  %s279_s17 = scalar_lea.vmem [#allocation2], %s2170_s14 }
  0x74   : > { %s3161_s19 = scalar_lea.hbm %s3380_s0, %s2171_s15  ;;  %s286_s10 = sshll.u32 %s279_s17, 4  ;;  %s3163_s10 = int_to_ptr.vmem [resolvable:$true] %s286_s10 }
  0x75   : > { %p3167_p11 = pnand %p2469_p9, %p3136_p0  ;;  %s276_s21 = scalar_lea.sflag [#allocation3], %s275_s28 }
  0x76   : > { %s2823_s22 = scalar_lea.hbm %s3161_s19, 64  ;;  %s2828_s13 = scalar_lea.hbm %s3380_s0, 128 }
  0x77   : > { %p2824_p12 = scmp.ne.s32.totalorder %s3161_s19, %s2823_s22  ;;  %p2825_p1 = pneg %p3167_p11 }
  0x78   : > { %p2829_p13 = scmp.lt.u32.totalorder %s3161_s19, %s3380_s0  ;;  %p2830_p0 = scmp.lt.u32.totalorder %s2828_s13, %s2823_s22 }
  0x79   : > { %p2826_p3 = pnand %p2825_p1, %p2824_p12  ;;  %p2832_p5 = scmp.lt.u32.totalorder %s2823_s22, %s3161_s19 }
  0x7a   : > { %p2831_p2 = por %p2830_p0, %p2829_p13 }
  0x7b   : > { %p2827_p8 = pneg %p2826_p3 }
  0x7c   : > { %p2833_p7 = por %p2832_p5, %p2831_p2 }
  0x7e   : > { %p2834_p9 = pnand %p2833_p7, %p2827_p8 }
  0x80   : > { %2837 = shalt.err (!%p2834_p9)
}
  0x81   : > { %s2838_s28 = scalar_lea.vmem %s3163_s10, 64  ;;  %s2937_s17 = smov [#allocation2]  }
  0x82   : > { %p2839_p12 = scmp.ne.s32.totalorder %s3163_s10, %s2838_s28  ;;  %s2843_s14 = sshll.u32 %s2937_s17, 4  ;;  %s2844_s14 = int_to_ptr.vmem [resolvable:$false] %s2843_s14 }
  0x83   : > { %s2845_s15 = scalar_lea.vmem %s2844_s14, 128  ;;  %p2846_p4 = scmp.lt.s32.totalorder %s3163_s10, %s2844_s14 }
  0x84   : > { %p2841_p3 = pnand %p2839_p12, %p2825_p1  ;;  %p2847_p13 = scmp.lt.s32.totalorder %s2845_s15, %s2838_s28 }
  0x86   : > { %p2842_p10 = pneg %p2841_p3  ;;  %p2848_p0 = por %p2847_p13, %p2846_p4 }
  0x88   : > { %p2849_p2 = pnand %p2848_p0, %p2842_p10 }
  0x8a   : > { %2852 = shalt.err (!%p2849_p2)
}
  0x8b   : > { %2460 = dma.hbm_to_vmem [thread:$0]  (!%p3167_p11), %s3161_s19, 64, %s3163_s10, %s276_s21  }
  0x8c   : > { %p3400_p8 = scmp.ne.s32.totalorder %s3391_s8, 0 }
  0x8d   : > { %s3199_s22 = sand.u32 (!%p3400_p8), 1, %s2919_s25  }
  0x8e   : > { %295 = sbr.rel (%p3400_p8) target bundleno = 1571 (0x623), region = 48  ;;  %s2173_s13 = sshll.u32 (!%p3400_p8), %s3199_s22, 2 }
  0x8f   : > { %s298_s11 = scalar_lea.sflag (!%p3400_p8), [#allocation3], %s3199_s22  ;;  %s3203_s16 = scalar_lea.vmem (!%p3400_p8), [#allocation2], %s2173_s13 }
  0x95   : > { %2898 = dma.done.wait (%p3142_p6), %s298_s11, 64  }
  0x96   : > { %2900 = vsyncadd (%p3142_p6), %s298_s11, 4294967232  ;;  %p3401_p4 = scmp.eq.s32.totalorder %s3004_s30, 0 }
  0x98   : > { %2902 = dma.done.wait (%p3401_p4), [#allocation6], 12480   ;;  %p3402_p10 = pmov %p3401_p4 }
  0x99   : > { %p3403_p11 = pmov %p3401_p4 }
  0x9a   : > { %2904 = vsyncadd (%p3402_p10), [#allocation6], 4294954816 }
  0x9b   : > { %2906 = dma.done.wait (%p3403_p11), [#allocation9], 4224   ;;  %p3404_p1 = pmov %p3401_p4 }
  0x9c   : > { %v2938_v0 = vmov 0   ;;  %v2519_v1 = vld [vmem:[#allocation5 + $0x4] ss:$48 sps:$4 sm:$0xff]   ;;  %v2521_v2 = vld [vmem:[#allocation5 + $0xc] ss:$48 sps:$4 sm:$0xff]   ;;  %vm2940_vm0 = vmmov 0  }
  0x9d   : > { %2908 = vsyncadd (%p3404_p1), [#allocation9], 4294963072  ;;  %1022 = vmatprep.mubr.bf16.mxu0 %v2938_v0  ;;  %1063 = vmatprep.mubr.bf16.mxu1 %v2938_v0  ;;  %v2523_v3 = vld [vmem:[#allocation5] ss:$48 sps:$4 sm:$0xff]   ;;  %v2524_v4 = vld [vmem:[#allocation5 + $0x8] ss:$48 sps:$4 sm:$0xff]  }
  0x9e   : > { %990 = vmatprep.subr.bf16.mxu0 %v2519_v1  ;;  %1031 = vmatprep.subr.bf16.mxu1 %v2521_v2  ;;  %v2525_v5 = vld [vmem:[#allocation5 + $0x64] ss:$48 sps:$4 sm:$0xff]   ;;  %v2527_v6 = vld [vmem:[#allocation5 + $0x6c] ss:$48 sps:$4 sm:$0xff]   ;;  %v2529_v7 = vld [vmem:[#allocation5 + $0x60] ss:$48 sps:$4 sm:$0xff]  }
  0x9f   : > { %991 = vmatpush1.bf16.msra.mxu0 %v2523_v3  ;;  %1032 = vmatpush1.bf16.msra.mxu1 %v2524_v4  ;;  %v2530_v8 = vld [vmem:[#allocation5 + $0x68] ss:$48 sps:$4 sm:$0xff]   ;;  %v2531_v9 = vld [vmem:[#allocation5 + $0xc4] ss:$48 sps:$4 sm:$0xff]   ;;  %v2533_v10 = vld [vmem:[#allocation5 + $0xcc] ss:$48 sps:$4 sm:$0xff]  }
  0xa0   : > { %992 = vmatprep.subr.bf16.mxu0 %v2525_v5  ;;  %1033 = vmatprep.subr.bf16.mxu1 %v2527_v6  ;;  %v2535_v11 = vld [vmem:[#allocation5 + $0xc0] ss:$48 sps:$4 sm:$0xff]   ;;  %v2536_v12 = vld [vmem:[#allocation5 + $0xc8] ss:$48 sps:$4 sm:$0xff]   ;;  %v2537_v13 = vld [vmem:[#allocation5 + $0x124] ss:$48 sps:$4 sm:$0xff]  }
  0xa1   : > { %v2539_v14 = vld [vmem:[#allocation5 + $0x12c] ss:$48 sps:$4 sm:$0xff]   ;;  %v2541_v15 = vld [vmem:[#allocation5 + $0x120] ss:$48 sps:$4 sm:$0xff]   ;;  %v2542_v16 = vld [vmem:[#allocation5 + $0x128] ss:$48 sps:$4 sm:$0xff]  }
  0xa2   : > { %v2543_v17 = vld [vmem:[#allocation5 + $0x184] ss:$48 sps:$4 sm:$0xff]   ;;  %v2545_v18 = vld [vmem:[#allocation5 + $0x18c] ss:$48 sps:$4 sm:$0xff]   ;;  %v2547_v19 = vld [vmem:[#allocation5 + $0x180] ss:$48 sps:$4 sm:$0xff]  }
  0xa3   : > { %993 = vmatpush1.bf16.msra.mxu0 %v2529_v7  ;;  %1034 = vmatpush1.bf16.msra.mxu1 %v2530_v8  ;;  %v2548_v20 = vld [vmem:[#allocation5 + $0x188] ss:$48 sps:$4 sm:$0xff]   ;;  %v2549_v21 = vld [vmem:[#allocation5 + $0x1e4] ss:$48 sps:$4 sm:$0xff]   ;;  %v2551_v22 = vld [vmem:[#allocation5 + $0x1ec] ss:$48 sps:$4 sm:$0xff]  }
  0xa4   : > { %994 = vmatprep.subr.bf16.mxu0 %v2531_v9  ;;  %1035 = vmatprep.subr.bf16.mxu1 %v2533_v10  ;;  %v2553_v23 = vld [vmem:[#allocation5 + $0x1e0] ss:$48 sps:$4 sm:$0xff]   ;;  %v2554_v24 = vld [vmem:[#allocation5 + $0x1e8] ss:$48 sps:$4 sm:$0xff]   ;;  %v2555_v25 = vld [vmem:[#allocation5 + $0x244] ss:$48 sps:$4 sm:$0xff]  }
  0xa5   : > { %v2557_v26 = vld [vmem:[#allocation5 + $0x24c] ss:$48 sps:$4 sm:$0xff]   ;;  %v2559_v27 = vld [vmem:[#allocation5 + $0x240] ss:$48 sps:$4 sm:$0xff]   ;;  %v2560_v28 = vld [vmem:[#allocation5 + $0x248] ss:$48 sps:$4 sm:$0xff]  }
  0xa6   : > { %v2561_v29 = vld [vmem:[#allocation5 + $0x2a4] ss:$48 sps:$4 sm:$0xff]   ;;  %v2563_v30 = vld [vmem:[#allocation5 + $0x2ac] ss:$48 sps:$4 sm:$0xff]   ;;  %v2565_v31 = vld [vmem:[#allocation5 + $0x2a0] ss:$48 sps:$4 sm:$0xff]  }
  0xa7   : > { %995 = vmatpush1.bf16.msra.mxu0 %v2535_v11  ;;  %1036 = vmatpush1.bf16.msra.mxu1 %v2536_v12  ;;  %v2566_v32 = vld [vmem:[#allocation5 + $0x2a8] ss:$48 sps:$4 sm:$0xff]   ;;  %v2569_v33 = vld [vmem:[#allocation5 + $0x14] ss:$48 sps:$4 sm:$0xff]   ;;  %v2572_v34 = vld [vmem:[#allocation5 + $0x1c] ss:$48 sps:$4 sm:$0xff]  }
  0xa8   : > { %996 = vmatprep.subr.bf16.mxu0 %v2537_v13  ;;  %1037 = vmatprep.subr.bf16.mxu1 %v2539_v14  ;;  %v3220_v35 = vld [vmem:[%s3203_s16] sm:$0xf]  ;;  %v2567_v36 = vld [vmem:[#allocation5 + $0x10] ss:$48 sps:$4 sm:$0xff]   ;;  %v2575_v38 = vld [vmem:[#allocation5 + $0x74] ss:$48 sps:$4 sm:$0xff]  }
  0xa9   : > { %v2570_v37 = vld [vmem:[#allocation5 + $0x18] ss:$48 sps:$4 sm:$0xff]   ;;  %v2578_v39 = vld [vmem:[#allocation5 + $0x7c] ss:$48 sps:$4 sm:$0xff]   ;;  %v2573_v40 = vld [vmem:[#allocation5 + $0x70] ss:$48 sps:$4 sm:$0xff]  }
  0xaa   : > { %v2576_v41 = vld [vmem:[#allocation5 + $0x78] ss:$48 sps:$4 sm:$0xff]   ;;  %v2581_v42 = vld [vmem:[#allocation5 + $0xd4] ss:$48 sps:$4 sm:$0xff]   ;;  %v2584_v43 = vld [vmem:[#allocation5 + $0xdc] ss:$48 sps:$4 sm:$0xff]  }
  0xab   : > { %997 = vmatpush1.bf16.msra.mxu0 %v2541_v15  ;;  %1038 = vmatpush1.bf16.msra.mxu1 %v2542_v16  ;;  %v2579_v44 = vld [vmem:[#allocation5 + $0xd0] ss:$48 sps:$4 sm:$0xff]   ;;  %v2582_v45 = vld [vmem:[#allocation5 + $0xd8] ss:$48 sps:$4 sm:$0xff]   ;;  %v2587_v46 = vld [vmem:[#allocation5 + $0x134] ss:$48 sps:$4 sm:$0xff]  }
  0xac   : > { %998 = vmatprep.subr.bf16.mxu0 %v2543_v17  ;;  %1039 = vmatprep.subr.bf16.mxu1 %v2545_v18  ;;  %v2590_v47 = vld [vmem:[#allocation5 + $0x13c] ss:$48 sps:$4 sm:$0xff]   ;;  %v2585_v48 = vld [vmem:[#allocation5 + $0x130] ss:$48 sps:$4 sm:$0xff]   ;;  %v2588_v49 = vld [vmem:[#allocation5 + $0x138] ss:$48 sps:$4 sm:$0xff]  }
  0xad   : > { %v2593_v50 = vld [vmem:[#allocation5 + $0x194] ss:$48 sps:$4 sm:$0xff]   ;;  %v2596_v51 = vld [vmem:[#allocation5 + $0x19c] ss:$48 sps:$4 sm:$0xff]   ;;  %v2591_v52 = vld [vmem:[#allocation5 + $0x190] ss:$48 sps:$4 sm:$0xff]  }
  0xae   : > { %v2594_v53 = vld [vmem:[#allocation5 + $0x198] ss:$48 sps:$4 sm:$0xff]   ;;  %v2599_v54 = vld [vmem:[#allocation5 + $0x1f4] ss:$48 sps:$4 sm:$0xff]   ;;  %v2602_v55 = vld [vmem:[#allocation5 + $0x1fc] ss:$48 sps:$4 sm:$0xff]  }
  0xaf   : > { %999 = vmatpush1.bf16.msra.mxu0 %v2547_v19  ;;  %1040 = vmatpush1.bf16.msra.mxu1 %v2548_v20  ;;  %v2597_v56 = vld [vmem:[#allocation5 + $0x1f0] ss:$48 sps:$4 sm:$0xff]   ;;  %v2600_v57 = vld [vmem:[#allocation5 + $0x1f8] ss:$48 sps:$4 sm:$0xff]   ;;  %v2605_v58 = vld [vmem:[#allocation5 + $0x254] ss:$48 sps:$4 sm:$0xff]  }
  0xb0   : > { %1000 = vmatprep.subr.bf16.mxu0 %v2549_v21  ;;  %1041 = vmatprep.subr.bf16.mxu1 %v2551_v22  ;;  %v2608_v59 = vld [vmem:[#allocation5 + $0x25c] ss:$48 sps:$4 sm:$0xff]   ;;  %v2603_v60 = vld [vmem:[#allocation5 + $0x250] ss:$48 sps:$4 sm:$0xff]   ;;  %v2606_v61 = vld [vmem:[#allocation5 + $0x258] ss:$48 sps:$4 sm:$0xff]  }
  0xb1   : > { %v2611_v62 = vld [vmem:[#allocation5 + $0x2b4] ss:$48 sps:$4 sm:$0xff]   ;;  %v2614_v63 = vld [vmem:[#allocation5 + $0x2bc] ss:$48 sps:$4 sm:$0xff]   ;;  %v2609_v1 = vld [vmem:[#allocation5 + $0x2b0] ss:$48 sps:$4 sm:$0xff]  }
  0xb2   : > { %v2612_v2 = vld [vmem:[#allocation5 + $0x2b8] ss:$48 sps:$4 sm:$0xff]   ;;  %v2617_v3 = vld [vmem:[#allocation5 + $0x24] ss:$48 sps:$4 sm:$0xff]   ;;  %v2620_v4 = vld [vmem:[#allocation5 + $0x2c] ss:$48 sps:$4 sm:$0xff]  }
  0xb3   : > { %1001 = vmatpush1.bf16.msra.mxu0 %v2553_v23  ;;  %1042 = vmatpush1.bf16.msra.mxu1 %v2554_v24  ;;  %v2615_v5 = vld [vmem:[#allocation5 + $0x20] ss:$48 sps:$4 sm:$0xff]   ;;  %v2618_v6 = vld [vmem:[#allocation5 + $0x28] ss:$48 sps:$4 sm:$0xff]   ;;  %v2623_v7 = vld [vmem:[#allocation5 + $0x84] ss:$48 sps:$4 sm:$0xff]  }
  0xb4   : > { %1002 = vmatprep.subr.bf16.mxu0 %v2555_v25  ;;  %1043 = vmatprep.subr.bf16.mxu1 %v2557_v26  ;;  %v2626_v8 = vld [vmem:[#allocation5 + $0x8c] ss:$48 sps:$4 sm:$0xff]   ;;  %v2621_v9 = vld [vmem:[#allocation5 + $0x80] ss:$48 sps:$4 sm:$0xff]   ;;  %v2624_v10 = vld [vmem:[#allocation5 + $0x88] ss:$48 sps:$4 sm:$0xff]  }
  0xb5   : > { %v2629_v11 = vld [vmem:[#allocation5 + $0xe4] ss:$48 sps:$4 sm:$0xff]   ;;  %v2632_v12 = vld [vmem:[#allocation5 + $0xec] ss:$48 sps:$4 sm:$0xff]   ;;  %v2627_v13 = vld [vmem:[#allocation5 + $0xe0] ss:$48 sps:$4 sm:$0xff]  }
  0xb6   : > { %v2630_v14 = vld [vmem:[#allocation5 + $0xe8] ss:$48 sps:$4 sm:$0xff]   ;;  %v2635_v15 = vld [vmem:[#allocation5 + $0x144] ss:$48 sps:$4 sm:$0xff]   ;;  %v2638_v16 = vld [vmem:[#allocation5 + $0x14c] ss:$48 sps:$4 sm:$0xff]  }
  0xb7   : > { %1003 = vmatpush1.bf16.msra.mxu0 %v2559_v27  ;;  %1044 = vmatpush1.bf16.msra.mxu1 %v2560_v28  ;;  %v2633_v17 = vld [vmem:[#allocation5 + $0x140] ss:$48 sps:$4 sm:$0xff]   ;;  %v2636_v18 = vld [vmem:[#allocation5 + $0x148] ss:$48 sps:$4 sm:$0xff]   ;;  %v2641_v19 = vld [vmem:[#allocation5 + $0x1a4] ss:$48 sps:$4 sm:$0xff]  }
  0xb8   : > { %1004 = vmatprep.subr.bf16.mxu0 %v2561_v29  ;;  %1045 = vmatprep.subr.bf16.mxu1 %v2563_v30  ;;  %v2644_v20 = vld [vmem:[#allocation5 + $0x1ac] ss:$48 sps:$4 sm:$0xff]   ;;  %v2639_v21 = vld [vmem:[#allocation5 + $0x1a0] ss:$48 sps:$4 sm:$0xff]   ;;  %v2642_v22 = vld [vmem:[#allocation5 + $0x1a8] ss:$48 sps:$4 sm:$0xff]  }
  0xb9   : > { %v2647_v23 = vld [vmem:[#allocation5 + $0x204] ss:$48 sps:$4 sm:$0xff]   ;;  %v2650_v24 = vld [vmem:[#allocation5 + $0x20c] ss:$48 sps:$4 sm:$0xff]   ;;  %v2648_v25 = vld [vmem:[#allocation5 + $0x208] ss:$48 sps:$4 sm:$0xff]  }
  0xba   : > { %v2653_v26 = vld [vmem:[#allocation5 + $0x264] ss:$48 sps:$4 sm:$0xff]   ;;  %v2656_v27 = vld [vmem:[#allocation5 + $0x26c] ss:$48 sps:$4 sm:$0xff]   ;;  %v2651_v28 = vld [vmem:[#allocation5 + $0x260] ss:$48 sps:$4 sm:$0xff]  }
  0xbb   : > { %1005 = vmatpush1.bf16.msra.mxu0 %v2565_v31  ;;  %1046 = vmatpush1.bf16.msra.mxu1 %v2566_v32  ;;  %v2654_v29 = vld [vmem:[#allocation5 + $0x268] ss:$48 sps:$4 sm:$0xff]   ;;  %v2659_v30 = vld [vmem:[#allocation5 + $0x2c4] ss:$48 sps:$4 sm:$0xff]   ;;  %v2662_v31 = vld [vmem:[#allocation5 + $0x2cc] ss:$48 sps:$4 sm:$0xff]  }
  0xbc   : > { %1072 = vmatprep.subr.bf16.mxu0 %v2569_v33  ;;  %1113 = vmatprep.subr.bf16.mxu1 %v2572_v34  ;;  %v2657_v32 = vld [vmem:[#allocation5 + $0x2c0] ss:$48 sps:$4 sm:$0xff]   ;;  %v2660_v33 = vld [vmem:[#allocation5 + $0x2c8] ss:$48 sps:$4 sm:$0xff]   ;;  %v2939_v34 = vmov 0.0   ;;  %vm1313_vm1 = vcmask 1043456  }
  0xbd   : > { %s2941_s8 = smov 64   ;;  %vm1296_vm3 = vcmask 64512   ;;  %s2178_s10 = sshll.u32 %s3199_s22, 3 }
  0xbe   : > { %1023 = vmatmul.mubr.bf16.vlgmr.msra.gmra.mrb[0].mxu0 %v3220_v35  ;;  %1064 = vmatmul.mubr.bf16.vlgmr.msra.gmra.mrb[0].mxu1 %v3220_v35  ;;  %s2313_s28 = sshll.u32 %s3004_s30, 7  ;;  %s347_s17 = scalar_lea.vmem [#allocation11], %s2178_s10 }
  0xbf   : > { %1073 = vmatpush1.bf16.msra.mxu0 %v2567_v36  ;;  %1114 = vmatpush1.bf16.msra.mxu1 %v2570_v37  ;;  %v450_v36 = vlaneseq  ;;  %s2055_s14 = sshll.u32 %s347_s17, 4  ;;  %s3336_s11 = scalar_lea.hbm %s3387_s7, %s2313_s28  ;;  %s3338_s14 = int_to_ptr.vmem [resolvable:$true] %s2055_s14 }
  0xc0   : > { %1074 = vmatprep.subr.bf16.mxu0 %v2575_v38  ;;  %1115 = vmatprep.subr.bf16.mxu1 %v2578_v39  ;;  %v447_v38 = vld [vmem:[#allocation7 + $0x8] sm:$0xf]  ;;  %s2042_s16 = scalar_lea.sflag [#allocation4], %s3199_s22  ;;  %s2853_s30 = scalar_lea.vmem %s3338_s14, 128 }
  0xc1   : > { %1104 = vmatprep.mubr.bf16.mxu0 %v2938_v0  ;;  %1145 = vmatprep.mubr.bf16.mxu1 %v2938_v0  ;;  %v3235_v37 = vshrl.u32 %v450_v36, 7  ;;  %p2854_p6 = scmp.ne.s32.totalorder %s3338_s14, %s2853_s30  ;;  %p3405_p5 = scmp.ne.s32.totalorder %s3397_s9, 0 }
  0xc3   : > { %1075 = vmatpush1.bf16.msra.mxu0 %v2573_v40  ;;  %1116 = vmatpush1.bf16.msra.mxu1 %v2576_v41  ;;  %v464_v39 = vsub.s32 3, %v3235_v37  ;;  %v460_v41 = vsub.s32 2, %v3235_v37  ;;  %p2855_p7 = pnand %p2854_p6, %p3405_p5 }
  0xc4   : > { %1076 = vmatprep.subr.bf16.mxu0 %v2581_v42  ;;  %1117 = vmatprep.subr.bf16.mxu1 %v2584_v43  ;;  %v3241_v42 = vld [vmem:[#allocation7] sm:$0xff]  ;;  %v452_v43 = vsub.s32 0, %v3235_v37 }
  0xc5   : > { %v3238_v40 = vrot.slane %v447_v38, %v464_v39  ;;  %p2856_p9 = pneg %p2855_p7 }
  0xc7   : > { %1077 = vmatpush1.bf16.msra.mxu0 %v2579_v44  ;;  %1118 = vmatpush1.bf16.msra.mxu1 %v2582_v45  ;;  %v461_v44 = vrot.slane %v3241_v42, %v460_v41 }
  0xc8   : > { %1078 = vmatprep.subr.bf16.mxu0 %v2587_v46  ;;  %1119 = vmatprep.subr.bf16.mxu1 %v2590_v47  ;;  %v453_v46 = vrot.slane %v3241_v42, %v452_v43 }
  0xcb   : > { %1079 = vmatpush1.bf16.msra.mxu0 %v2585_v48  ;;  %1120 = vmatpush1.bf16.msra.mxu1 %v2588_v49 }
  0xcc   : > { %1080 = vmatprep.subr.bf16.mxu0 %v2593_v50  ;;  %1121 = vmatprep.subr.bf16.mxu1 %v2596_v51 }
  0xcf   : > { %1081 = vmatpush1.bf16.msra.mxu0 %v2591_v52  ;;  %1122 = vmatpush1.bf16.msra.mxu1 %v2594_v53 }
  0xd0   : > { %1082 = vmatprep.subr.bf16.mxu0 %v2599_v54  ;;  %1123 = vmatprep.subr.bf16.mxu1 %v2602_v55 }
  0xd3   : > { %1083 = vmatpush1.bf16.msra.mxu0 %v2597_v56  ;;  %1124 = vmatpush1.bf16.msra.mxu1 %v2600_v57 }
  0xd4   : > { %1084 = vmatprep.subr.bf16.mxu0 %v2605_v58  ;;  %1125 = vmatprep.subr.bf16.mxu1 %v2608_v59 }
  0xd7   : > { %1085 = vmatpush1.bf16.msra.mxu0 %v2603_v60  ;;  %1126 = vmatpush1.bf16.msra.mxu1 %v2606_v61  ;;  %v468_v60 = vsub.s32 4, %v3235_v37  ;;  %v480_v61 = vsub.s32 7, %v3235_v37 }
  0xd8   : > { %1086 = vmatprep.subr.bf16.mxu0 %v2611_v62  ;;  %1127 = vmatprep.subr.bf16.mxu1 %v2614_v63 }
  0xd9   : > { %v469_v62 = vrot.slane %v3241_v42, %v468_v60  ;;  %v481_v63 = vrot.slane %v3241_v42, %v480_v61 }
  0xdb   : > { %1087 = vmatpush1.bf16.msra.mxu0 %v2609_v1  ;;  %1128 = vmatpush1.bf16.msra.mxu1 %v2612_v2 }
  0xdc   : > { %1154 = vmatprep.subr.bf16.mxu0 %v2617_v3  ;;  %1195 = vmatprep.subr.bf16.mxu1 %v2620_v4  ;;  %v465_v3 = vrot.slane %v3241_v42, %v464_v39 }
  0xde   : > { %1105 = vmatmul.mubr.bf16.vlgmr.msra.gmra.mrb[4].mxu0 %v3220_v35  ;;  %1146 = vmatmul.mubr.bf16.vlgmr.msra.gmra.mrb[4].mxu1 %v3220_v35 }
  0xdf   : > { %1155 = vmatpush1.bf16.msra.mxu0 %v2615_v5  ;;  %1196 = vmatpush1.bf16.msra.mxu1 %v2618_v6  ;;  %v476_v5 = vsub.s32 6, %v3235_v37 }
  0xe0   : > { %1156 = vmatprep.subr.bf16.mxu0 %v2623_v7  ;;  %1197 = vmatprep.subr.bf16.mxu1 %v2626_v8 }
  0xe1   : > { %1186 = vmatprep.mubr.bf16.mxu0 %v2938_v0  ;;  %1227 = vmatprep.mubr.bf16.mxu1 %v2938_v0  ;;  %v2645_v0 = vld [vmem:[#allocation5 + $0x200] ss:$48 sps:$4 sm:$0xff]  }
  0xe3   : > { %1157 = vmatpush1.bf16.msra.mxu0 %v2621_v9  ;;  %1198 = vmatpush1.bf16.msra.mxu1 %v2624_v10 }
  0xe4   : > { %1158 = vmatprep.subr.bf16.mxu0 %v2629_v11  ;;  %1199 = vmatprep.subr.bf16.mxu1 %v2632_v12 }
  0xe7   : > { %1159 = vmatpush1.bf16.msra.mxu0 %v2627_v13  ;;  %1200 = vmatpush1.bf16.msra.mxu1 %v2630_v14  ;;  %v477_v14 = vrot.slane %v3241_v42, %v476_v5 }
  0xe8   : > { %1160 = vmatprep.subr.bf16.mxu0 %v2635_v15  ;;  %1201 = vmatprep.subr.bf16.mxu1 %v2638_v16  ;;  %v485_v16 = vrot.slane %v447_v38, %v452_v43 }
  0xeb   : > { %1161 = vmatpush1.bf16.msra.mxu0 %v2633_v17  ;;  %1202 = vmatpush1.bf16.msra.mxu1 %v2636_v18  ;;  %v493_v17 = vrot.slane %v447_v38, %v460_v41 }
  0xec   : > { %1162 = vmatprep.subr.bf16.mxu0 %v2641_v19  ;;  %1203 = vmatprep.subr.bf16.mxu1 %v2644_v20 }
  0xef   : > { %1163 = vmatpush1.bf16.msra.mxu0 %v2639_v21  ;;  %1204 = vmatpush1.bf16.msra.mxu1 %v2642_v22 }
  0xf0   : > { %1164 = vmatprep.subr.bf16.mxu0 %v2647_v23  ;;  %1205 = vmatprep.subr.bf16.mxu1 %v2650_v24 }
  0xf3   : > { %1165 = vmatpush1.bf16.msra.mxu0 %v2645_v0  ;;  %1206 = vmatpush1.bf16.msra.mxu1 %v2648_v25 }
  0xf4   : > { %1166 = vmatprep.subr.bf16.mxu0 %v2653_v26  ;;  %1207 = vmatprep.subr.bf16.mxu1 %v2656_v27 }
  0xf7   : > { %1167 = vmatpush1.bf16.msra.mxu0 %v2651_v28  ;;  %1208 = vmatpush1.bf16.msra.mxu1 %v2654_v29 }
  0xf8   : > { %1168 = vmatprep.subr.bf16.mxu0 %v2659_v30  ;;  %1209 = vmatprep.subr.bf16.mxu1 %v2662_v31  ;;  %v1237_v30 = vld [vmem:[#allocation8] sm:$0xff]  ;;  %v1236_v31 = vld [vmem:[%s3383_s3] sm:$0xff] }
  0xfb   : > { %1169 = vmatpush1.bf16.msra.mxu0 %v2657_v32  ;;  %1210 = vmatpush1.bf16.msra.mxu1 %v2660_v33 }
  0xfc   : > { %2382 = vmatprep.subr.bf16.mxu1 %v2939_v34  ;;  %2376 = vmatprep.subr.bf16.mxu0 %v2939_v34 }
  0xfe   : > { %1187 = vmatmul.mubr.bf16.vlgmr.msra.gmra.mrb[8].mxu0 %v3220_v35  ;;  %1228 = vmatmul.mubr.bf16.vlgmr.msra.gmra.mrb[8].mxu1 %v3220_v35  ;;  %v456_v35 = vsub.s32 1, %v3235_v37 }
  0xff   : > { %2378 = vmatprep.mubr.msk.bf16.mxu0 %vm2940_vm0, %v2939_v34  ;;  %2384 = vmatprep.mubr.msk.bf16.mxu1 %vm2940_vm0, %v2939_v34 }
 0x100   : > { %v457_v45 = vrot.slane %v3241_v42, %v456_v35  ;;  %v489_v18 = vrot.slane %v447_v38, %v456_v35 }
 0x191   : > { %v1024_v47 = vpop.f32.mrb[0].mxu0  ;;  %v1065_v48 = vpop.f32.mrb[0].mxu1 }
 0x192   : > { %v1066_v49 = vadd.f32 %v1065_v48, %v461_v44  ;;  %v1026_v50 = vpop.f32.mrb[1].mxu0  ;;  %v1067_v51 = vpop.f32.mrb[1].mxu1  ;;  %v1025_v58 = vadd.f32 %v1024_v47, %v453_v46 }
 0x193   : > { %v1027_v52 = vadd.f32 %v1026_v50, %v457_v45  ;;  %v1069_v53 = vpop.f32.mrb[2].mxu1  ;;  %v1028_v54 = vpop.f32.mrb[2].mxu0  ;;  %v1068_v13 = vadd.f32 %v1067_v51, %v465_v3 }
 0x194   : > { %v1309_v55 = vpack.c.bf16 %v1066_v49, %v1066_v49  ;;  %v1070_v56 = vpop.f32.mrb[3].mxu1  ;;  %v1029_v57 = vpop.f32.mrb[3].mxu0  ;;  %v1243_v43 = vmul.f32 %v1236_v31, %v1025_v58 }
 0x195   : > { %1249 = vrot.lane.b32.xlu0 %v1027_v52, %s2941_s8  ;;  %v1248_v33 = vmul.f32 %v1236_v31, %v1027_v52 }
 0x196   : > { %v1315_v59 = vsel %vm1313_vm1, %v1309_v55, 0  ;;  %v1358_v55 = vmul.f32 %v1236_v31, %v1068_v13 }
 0x197   : > { %2383 = vmatpush3.bf16.msra.mxu1 %v1315_v59 }
 0x198   : > { %2394 = vmatprep.subr.bf16.mxu1 %v2939_v34 }
 0x199   : > { %1244 = vrot.lane.b32.xlu0 %v1025_v58, %s2941_s8 }
 0x1b1   : > { %v1106_v1 = vpop.f32.mrb[4].mxu0  ;;  %v1147_v2 = vpop.f32.mrb[4].mxu1 }
 0x1b2   : > { %v1107_v4 = vadd.f32 %v1106_v1, %v469_v62  ;;  %v1149_v6 = vpop.f32.mrb[5].mxu1  ;;  %v3262_v7 = vpop.f32.mrb[5].mxu0  ;;  %v1148_v15 = vadd.f32 %v1147_v2, %v477_v14  ;;  %v1241_v14 = vand.u32 127, %v450_v36 }
 0x1b3   : > { %v1150_v8 = vadd.f32 %v1149_v6, %v481_v63  ;;  %v1151_v9 = vpop.f32.mrb[6].mxu1  ;;  %v1110_v10 = vpop.f32.mrb[6].mxu0 }
 0x1b4   : > { %v1152_v11 = vpop.f32.mrb[7].mxu1  ;;  %1364 = vrot.lane.b32.xlu1 %v1107_v4, %s2941_s8  ;;  %v1111_v12 = vpop.f32.mrb[7].mxu0  ;;  %v1363_v47 = vmul.f32 %v1236_v31, %v1107_v4  ;;  %v1471_v63 = vmul.f32 %v1236_v31, %v1148_v15  ;;  %vm1242_vm2 = vcmp.gt.s32.totalorder %v1241_v14, %v3235_v37 }
 0x1b5   : > { %1477 = vrot.lane.b32.xlu0 %v1150_v8, %s2941_s8  ;;  %v1476_v56 = vmul.f32 %v1236_v31, %v1150_v8 }
 0x1b8   : > { %1359 = vrot.lane.b32.xlu1 %v1068_v13, %s2941_s8 }
 0x1bc   : > { %1472 = vrot.lane.b32.xlu1 %v1148_v15, %s2941_s8 }
 0x1d1   : > { %v1188_v19 = vpop.f32.mrb[8].mxu0  ;;  %v1229_v20 = vpop.f32.mrb[8].mxu1 }
 0x1d2   : > { %v3269_v21 = vadd.f32 %v1188_v19, %v485_v16  ;;  %v1230_v22 = vadd.f32 %v1229_v20, %v493_v17  ;;  %v1190_v23 = vpop.f32.mrb[9].mxu0  ;;  %v1231_v24 = vpop.f32.mrb[9].mxu1 }
 0x1d3   : > { %v1191_v0 = vadd.f32 %v1190_v23, %v489_v18  ;;  %v3272_v25 = vadd.f32 %v1231_v24, %v3238_v40  ;;  %v1233_v26 = vpop.f32.mrb[10].mxu1  ;;  %v1192_v27 = vpop.f32.mrb[10].mxu0 }
 0x1d4   : > { %v1234_v28 = vpop.f32.mrb[11].mxu1  ;;  %1590 = vrot.lane.b32.xlu0 %v1230_v22, %s2941_s8  ;;  %v1193_v29 = vpop.f32.mrb[11].mxu0  ;;  %v1589_v4 = vmul.f32 %v1236_v31, %v1230_v22 }
 0x1d5   : > { %1585 = vrot.lane.b32.xlu1 %v1191_v0, %s2941_s8  ;;  %v1584_v8 = vmul.f32 %v1236_v31, %v1191_v0  ;;  %s2942_s8 = smov [#allocation11]  }
 0x1d6   : > { %s2857_s29 = sshll.u32 %s2942_s8, 4  ;;  %s2858_s29 = int_to_ptr.vmem [resolvable:$false] %s2857_s29 }
 0x1d7   : > { %s2859_s19 = scalar_lea.vmem %s2858_s29, 256  ;;  %p2860_p12 = scmp.lt.s32.totalorder %s3338_s14, %s2858_s29 }
 0x1d8   : > { %p2861_p3 = scmp.lt.s32.totalorder %s2859_s19, %s2853_s30 }
 0x1da   : > { %p2862_p13 = por %p2861_p3, %p2860_p12 }
 0x1dc   : > { %p2863_p0 = pnand %p2862_p13, %p2856_p9 }
 0x207   : > { %v1250_v32 = vpop.permute.xlu0 %1249 }
 0x208   : > { %v1251_v38 = vmul.f32 %v1250_v32, %v1237_v30 }
 0x20a   : > { %v1252_v39 = vadd.f32 %v1251_v38, %v1248_v33 }
 0x20b   : > { %v1245_v41 = vpop.permute.xlu0 %1244 }
 0x20c   : > { %v1254_v40 = vpack.c.bf16 %v1252_v39, %v1252_v39  ;;  %v1246_v35 = vmul.f32 %v1245_v41, %v1237_v30 }
 0x20e   : > { %2377 = vmatpush3.bf16.xpose.msra.mxu0 %v1254_v40  ;;  %v1247_v44 = vadd.f32 %v1246_v35, %v1243_v43 }
 0x20f   : > { %2388 = vmatprep.subr.bf16.mxu0 %v2939_v34 }
 0x210   : > { %v1253_v45 = vpack.c.bf16 %v1247_v44, %v1247_v44 }
 0x215   : > { %2379 = vmatmul.mubr.bf16.vlgmr.msra.gmra.mrb[12].mxu0 %v1253_v45 }
 0x216   : > { %2390 = vmatprep.mubr.msk.bf16.mxu0 %vm2940_vm0, %v2939_v34 }
 0x226   : > { %v1365_v46 = vpop.permute.xlu1 %1364 }
 0x227   : > { %v1366_v48 = vmul.f32 %v1365_v46, %v1237_v30  ;;  %v1478_v49 = vpop.permute.xlu0 %1477 }
 0x228   : > { %v1479_v53 = vmul.f32 %v1478_v49, %v1237_v30 }
 0x229   : > { %v1367_v50 = vadd.f32 %v1366_v48, %v1363_v47 }
 0x22a   : > { %v1360_v51 = vpop.permute.xlu1 %1359  ;;  %v1480_v58 = vadd.f32 %v1479_v53, %v1476_v56 }
 0x22b   : > { %v1369_v52 = vpack.c.bf16 %v1367_v50, %v1367_v50  ;;  %v1361_v54 = vmul.f32 %v1360_v51, %v1237_v30 }
 0x22c   : > { %v1482_v62 = vpack.c.bf16 %v1480_v58, %v1480_v58 }
 0x22d   : > { %2389 = vmatpush3.bf16.xpose.msra.mxu0 %v1369_v52  ;;  %v1362_v57 = vadd.f32 %v1361_v54, %v1358_v55 }
 0x22e   : > { %2400 = vmatprep.subr.bf16.mxu0 %v2939_v34  ;;  %v1473_v59 = vpop.permute.xlu1 %1472 }
 0x22f   : > { %v1368_v60 = vpack.c.bf16 %v1362_v57, %v1362_v57  ;;  %v1474_v61 = vmul.f32 %v1473_v59, %v1237_v30 }
 0x231   : > { %v1475_v1 = vadd.f32 %v1474_v61, %v1471_v63  ;;  %v472_v63 = vsub.s32 5, %v3235_v37 }
 0x233   : > { %v1481_v2 = vpack.c.bf16 %v1475_v1, %v1475_v1 }
 0x234   : > { %2391 = vmatmul.mubr.bf16.vlgmr.msra.gmra.mrb[16].mxu0 %v1368_v60 }
 0x235   : > { %2401 = vmatpush3.bf16.xpose.msra.mxu0 %v1482_v62  ;;  %2402 = vmatprep.mubr.msk.bf16.mxu0 %vm2940_vm0, %v2939_v34 }
 0x236   : > { %2412 = vmatprep.subr.bf16.mxu0 %v2939_v34 }
 0x23c   : > { %2403 = vmatmul.mubr.bf16.vlgmr.msra.gmra.mrb[20].mxu0 %v1481_v2  ;;  %v473_v2 = vrot.slane %v3241_v42, %v472_v63 }
 0x23d   : > { %2414 = vmatprep.mubr.msk.bf16.mxu0 %vm2940_vm0, %v2939_v34 }
 0x246   : > { %v1591_v3 = vpop.permute.xlu0 %1590 }
 0x247   : > { %v1592_v5 = vmul.f32 %v1591_v3, %v1237_v30  ;;  %v1586_v6 = vpop.permute.xlu1 %1585  ;;  %v1109_v3 = vadd.f32 %v3262_v7, %v473_v2  ;;  %v1536_v7 = vpack.c.bf16 %v3269_v21, %v3269_v21 }
 0x248   : > { %v1587_v9 = vmul.f32 %v1586_v6, %v1237_v30 }
 0x249   : > { %v1593_v10 = vadd.f32 %v1592_v5, %v1589_v4  ;;  %v1423_v5 = vpack.c.bf16 %v1109_v3, %v1109_v3 }
 0x24a   : > { %v1588_v11 = vadd.f32 %v1587_v9, %v1584_v8 }
 0x24b   : > { %v1595_v12 = vpack.c.bf16 %v1593_v10, %v1593_v10  ;;  %v1428_v9 = vsel %vm1313_vm1, %v1423_v5, 0 }
 0x24c   : > { %v1594_v13 = vpack.c.bf16 %v1588_v11, %v1588_v11 }
 0x24d   : > { %2413 = vmatpush3.bf16.xpose.msra.mxu0 %v1595_v12 }
 0x254   : > { %2415 = vmatmul.mubr.bf16.vlgmr.msra.gmra.mrb[24].mxu0 %v1594_v13  ;;  %v1541_v13 = vsel %vm1313_vm1, %v1536_v7, 0 }
 0x2e8   : > { %v1289_v15 = vpop.f32.mrb[12].mxu0 }
 0x2e9   : > { %v1295_v16 = vsel %vm1242_vm2, -1e+30, %v1289_v15  ;;  %v2380_v17 = vpop.f32.mrb[13].mxu0  ;;  %v1649_v15 = vpack.c.bf16 %v3272_v25, %v3272_v25  ;;  %v2665_v25 = vld [vmem:[#allocation10 + $0x48] sm:$0xff]  }
 0x2ea   : > { %v1292_v18 = vpop.f32.mrb[14].mxu0  ;;  %v1297_v19 = vsel %vm1296_vm3, %v1295_v16, -inf }
 0x2eb   : > { %1298 = vmax.xlane.f32.xlu0 %v1297_v19  ;;  %v2381_v20 = vpop.f32.mrb[15].mxu0  ;;  %v1654_v21 = vsel %vm1313_vm1, %v1649_v15, 0 }
 0x307   : > { %v1404_v22 = vpop.f32.mrb[16].mxu0 }
 0x308   : > { %v1410_v23 = vsel %vm1242_vm2, -1e+30, %v1404_v22  ;;  %v2392_v24 = vpop.f32.mrb[17].mxu0 }
 0x309   : > { %v1407_v0 = vpop.f32.mrb[18].mxu0  ;;  %v1411_v36 = vsel %vm1296_vm3, %v1410_v23, -inf  ;;  %v2664_v24 = vld [vmem:[#allocation10] sm:$0xff]  }
 0x30a   : > { %1412 = vmax.xlane.f32.xlu1 %v1411_v36  ;;  %v2393_v26 = vpop.f32.mrb[19].mxu0  ;;  %v2666_v0 = vld [vmem:[#allocation10 + $0x8] sm:$0xff]   ;;  %v2667_v36 = vld [vmem:[#allocation10 + $0x50] sm:$0xff]  }
 0x30b   : > { %v2668_v26 = vld [vmem:[#allocation10 + $0x10] sm:$0xff]  }
 0x30f   : > { %v1517_v27 = vpop.f32.mrb[20].mxu0 }
 0x310   : > { %v1523_v28 = vsel %vm1242_vm2, -1e+30, %v1517_v27  ;;  %v2404_v29 = vpop.f32.mrb[21].mxu0  ;;  %v2669_v27 = vld [vmem:[#allocation10 + $0x58] sm:$0xff]  }
 0x311   : > { %v1520_v30 = vpop.f32.mrb[22].mxu0  ;;  %v1524_v31 = vsel %vm1296_vm3, %v1523_v28, -inf  ;;  %v2672_v29 = vld [vmem:[#allocation10 + $0x20] sm:$0xff]  }
 0x312   : > { %1525 = vmax.xlane.f32.xlu0 %v1524_v31  ;;  %v2405_v32 = vpop.f32.mrb[23].mxu0  ;;  %v2673_v30 = vld [vmem:[#allocation10 + $0x68] sm:$0xff]  }
 0x313   : > { %v2674_v31 = vld [vmem:[#allocation10 + $0x28] sm:$0xff]   ;;  %v2675_v32 = vld [vmem:[#allocation10 + $0x70] sm:$0xff]  }
 0x327   : > { %v1630_v33 = vpop.f32.mrb[24].mxu0 }
 0x328   : > { %v1636_v38 = vsel %vm1242_vm2, -1e+30, %v1630_v33  ;;  %v2416_v39 = vpop.f32.mrb[25].mxu0  ;;  %v2676_v33 = vld [vmem:[#allocation10 + $0x30] sm:$0xff]  }
 0x329   : > { %v1633_v41 = vpop.f32.mrb[26].mxu0  ;;  %v1637_v40 = vsel %vm1296_vm3, %v1636_v38, -inf  ;;  %v2678_v39 = vld [vmem:[#allocation10 + $0x38] sm:$0xff]  }
 0x32a   : > { %1638 = vmax.xlane.f32.xlu0 %v1637_v40  ;;  %v2417_v35 = vpop.f32.mrb[27].mxu0  ;;  %v2679_v41 = vld [vmem:[#allocation10 + $0xc0] sm:$0xff]  }
 0x32b   : > { %v2680_v40 = vld [vmem:[#allocation10 + $0x80] sm:$0xff]   ;;  %v2681_v35 = vld [vmem:[#allocation10 + $0xc8] sm:$0xff]  }
 0x378   : > { %v1299_v43 = vpop.xlane.xlu0 %1298 }
 0x379   : > { %v1300_v44 = vsub.f32 %v1295_v16, %v1299_v43  ;;  %v2682_v43 = vld [vmem:[#allocation10 + $0x88] sm:$0xff]  }
 0x37b   : > { %v1301_v45 = vmul.f32 1.442695, %v1300_v44  ;;  %v2683_v44 = vld [vmem:[#allocation10 + $0xd0] sm:$0xff]  }
 0x37d   : > { %2695 = vpow2.f32 %v1301_v45  ;;  %v2684_v45 = vld [vmem:[#allocation10 + $0x90] sm:$0xff]  }
 0x387   : > { %v2696_v46 = vpop.eup %2695 }
 0x388   : > { %v1303_v47 = vsel %vm1296_vm3, %v2696_v46, 0.0 }
 0x389   : > { %1304 = vadd.xlane.f32.xlu1 %v1303_v47  ;;  %v2686_v47 = vld [vmem:[#allocation10 + $0x98] sm:$0xff]  }
 0x397   : > { %v1413_v48 = vpop.xlane.xlu1 %1412 }
 0x398   : > { %v1414_v49 = vsub.f32 %v1410_v23, %v1413_v48  ;;  %v2663_v23 = vld [vmem:[#allocation10 + $0x40] sm:$0xff]  }
 0x399   : > { %2332 = vmatprep.subr.bf16.mxu0 %v2663_v23  ;;  %v2687_v48 = vld [vmem:[#allocation10 + $0xe0] sm:$0xff]  }
 0x39a   : > { %v1415_v50 = vmul.f32 1.442695, %v1414_v49  ;;  %2333 = vmatpush3.bf16.msra.mxu0 %v2664_v24  ;;  %v2688_v49 = vld [vmem:[#allocation10 + $0xa0] sm:$0xff]  }
 0x39b   : > { %2334 = vmatprep.subr.bf16.mxu0 %v2665_v25 }
 0x39c   : > { %2697 = vpow2.f32 %v1415_v50  ;;  %v2689_v50 = vld [vmem:[#allocation10 + $0xe8] sm:$0xff]  }
 0x39e   : > { %2335 = vmatpush3.bf16.msra.mxu0 %v2666_v0 }
 0x39f   : > { %v1526_v51 = vpop.xlane.xlu0 %1525  ;;  %2336 = vmatprep.subr.bf16.mxu0 %v2667_v36 }
 0x3a0   : > { %v1527_v52 = vsub.f32 %v1523_v28, %v1526_v51  ;;  %v2671_v28 = vld [vmem:[#allocation10 + $0x60] sm:$0xff]   ;;  %v2690_v51 = vld [vmem:[#allocation10 + $0xa8] sm:$0xff]  }
 0x3a2   : > { %v1528_v53 = vmul.f32 1.442695, %v1527_v52  ;;  %2337 = vmatpush3.bf16.msra.mxu0 %v2668_v26  ;;  %v2691_v52 = vld [vmem:[#allocation10 + $0xf0] sm:$0xff]  }
 0x3a3   : > { %2338 = vmatprep.subr.bf16.mxu0 %v2669_v27 }
 0x3a4   : > { %2699 = vpow2.f32 %v1528_v53  ;;  %v2692_v53 = vld [vmem:[#allocation10 + $0xb0] sm:$0xff]  }
 0x3a6   : > { %v2698_v54 = vpop.eup %2697 }
 0x3a7   : > { %v1417_v55 = vsel %vm1296_vm3, %v2698_v54, 0.0 }
 0x3a8   : > { %1418 = vadd.xlane.f32.xlu0 %v1417_v55  ;;  %v2694_v55 = vld [vmem:[#allocation10 + $0xb8] sm:$0xff]  }
 0x3ae   : > { %v2700_v56 = vpop.eup %2699 }
 0x3af   : > { %v1530_v57 = vsel %vm1296_vm3, %v2700_v56, 0.0 }
 0x3b0   : > { %1531 = vadd.xlane.f32.xlu1 %v1530_v57 }
 0x3b7   : > { %v1639_v58 = vpop.xlane.xlu0 %1638 }
 0x3b8   : > { %v1640_v59 = vsub.f32 %v1636_v38, %v1639_v58  ;;  %v2677_v38 = vld [vmem:[#allocation10 + $0x78] sm:$0xff]  }
 0x3ba   : > { %v1641_v60 = vmul.f32 1.442695, %v1640_v59 }
 0x3bc   : > { %2701 = vpow2.f32 %v1641_v60 }
 0x3c6   : > { %v2702_v61 = vpop.eup %2701 }
 0x3c7   : > { %v1643_v62 = vsel %vm1296_vm3, %v2702_v61, 0.0 }
 0x3c8   : > { %1644 = vadd.xlane.f32.xlu0 %v1643_v62 }
 0x416   : > { %v1305_v1 = vpop.xlane.xlu1 %1304 }
 0x417   : > { %2703 = vrcp.f32 %v1305_v1 }
 0x421   : > { %v2704_v4 = vpop.eup %2703 }
 0x422   : > { %v1307_v6 = vmul.f32 %v2704_v4, %v2696_v46  ;;  %v2685_v46 = vld [vmem:[#allocation10 + $0xd8] sm:$0xff]  }
 0x424   : > { %v1308_v8 = vpack.c.bf16 %v1307_v6, %v1307_v6 }
 0x426   : > { %2385 = vmatmul.mubr.msk.bf16.vlgmr.msra.gmra.mrb[12].mxu1 %vm1296_vm3, %v1308_v8 }
 0x427   : > { %2395 = vmatpush3.bf16.msra.mxu1 %v1428_v9  ;;  %2396 = vmatprep.mubr.msk.bf16.mxu1 %vm2940_vm0, %v2939_v34 }
 0x428   : > { %2406 = vmatprep.subr.bf16.mxu1 %v2939_v34 }
 0x435   : > { %v1419_v37 = vpop.xlane.xlu0 %1418 }
 0x436   : > { %2705 = vrcp.f32 %v1419_v37 }
 0x43d   : > { %v1532_v10 = vpop.xlane.xlu1 %1531 }
 0x43e   : > { %2707 = vrcp.f32 %v1532_v10 }
 0x440   : > { %v2706_v42 = vpop.eup %2705 }
 0x441   : > { %v1421_v11 = vmul.f32 %v2706_v42, %v2698_v54  ;;  %v2693_v54 = vld [vmem:[#allocation10 + $0xf8] sm:$0xff]  }
 0x443   : > { %v1422_v12 = vpack.c.bf16 %v1421_v11, %v1421_v11 }
 0x445   : > { %2397 = vmatmul.mubr.msk.bf16.vlgmr.msra.gmra.mrb[16].mxu1 %vm1296_vm3, %v1422_v12 }
 0x446   : > { %2407 = vmatpush3.bf16.msra.mxu1 %v1541_v13  ;;  %2408 = vmatprep.mubr.msk.bf16.mxu1 %vm2940_vm0, %v2939_v34 }
 0x447   : > { %2418 = vmatprep.subr.bf16.mxu1 %v2939_v34 }
 0x448   : > { %v2708_v14 = vpop.eup %2707 }
 0x449   : > { %v1534_v16 = vmul.f32 %v2708_v14, %v2700_v56 }
 0x44b   : > { %v1535_v17 = vpack.c.bf16 %v1534_v16, %v1534_v16  ;;  %v2279_v16 = vld [vmem:[%s3386_s6] ss:$0 sm:$0xff] }
 0x44d   : > { %2409 = vmatmul.mubr.msk.bf16.vlgmr.msra.gmra.mrb[20].mxu1 %vm1296_vm3, %v1535_v17 }
 0x44e   : > { %2419 = vmatpush3.bf16.msra.mxu1 %v1654_v21  ;;  %2420 = vmatprep.mubr.msk.bf16.mxu1 %vm2940_vm0, %v2939_v34  ;;  %v2670_v34 = vld [vmem:[#allocation10 + $0x18] sm:$0xff]  }
 0x44f   : > { %2339 = vmatpush3.bf16.msra.mxu0 %v2670_v34  ;;  %2354 = vmatprep.subr.bf16.mxu1 %v2679_v41 }
 0x450   : > { %2340 = vmatprep.subr.bf16.mxu0 %v2671_v28 }
 0x453   : > { %2341 = vmatpush3.bf16.msra.mxu0 %v2672_v29 }
 0x454   : > { %2342 = vmatprep.subr.bf16.mxu0 %v2673_v30 }
 0x455   : > { %v1645_v18 = vpop.xlane.xlu0 %1644 }
 0x456   : > { %2709 = vrcp.f32 %v1645_v18 }
 0x457   : > { %2343 = vmatpush3.bf16.msra.mxu0 %v2674_v31 }
 0x458   : > { %2344 = vmatprep.subr.bf16.mxu0 %v2675_v32 }
 0x45b   : > { %2345 = vmatpush3.bf16.msra.mxu0 %v2676_v33 }
 0x45c   : > { %2346 = vmatprep.subr.bf16.mxu0 %v2677_v38 }
 0x45f   : > { %2347 = vmatpush3.bf16.msra.mxu0 %v2678_v39 }
 0x460   : > { %v2710_v19 = vpop.eup %2709 }
 0x461   : > { %v1647_v20 = vmul.f32 %v2710_v19, %v2702_v61 }
 0x463   : > { %v1648_v22 = vpack.c.bf16 %v1647_v20, %v1647_v20 }
 0x465   : > { %2421 = vmatmul.mubr.msk.bf16.vlgmr.msra.gmra.mrb[24].mxu1 %vm1296_vm3, %v1648_v22 }
 0x466   : > { %2355 = vmatpush3.bf16.msra.mxu1 %v2680_v40 }
 0x467   : > { %2356 = vmatprep.subr.bf16.mxu1 %v2681_v35 }
 0x46a   : > { %2357 = vmatpush3.bf16.msra.mxu1 %v2682_v43 }
 0x46b   : > { %2358 = vmatprep.subr.bf16.mxu1 %v2683_v44 }
 0x46e   : > { %2359 = vmatpush3.bf16.msra.mxu1 %v2684_v45 }
 0x46f   : > { %2360 = vmatprep.subr.bf16.mxu1 %v2685_v46 }
 0x472   : > { %2361 = vmatpush3.bf16.msra.mxu1 %v2686_v47 }
 0x473   : > { %2362 = vmatprep.subr.bf16.mxu1 %v2687_v48 }
 0x476   : > { %2363 = vmatpush3.bf16.msra.mxu1 %v2688_v49 }
 0x477   : > { %2364 = vmatprep.subr.bf16.mxu1 %v2689_v50 }
 0x47a   : > { %2365 = vmatpush3.bf16.msra.mxu1 %v2690_v51 }
 0x47b   : > { %2366 = vmatprep.subr.bf16.mxu1 %v2691_v52 }
 0x47e   : > { %2367 = vmatpush3.bf16.msra.mxu1 %v2692_v53 }
 0x47f   : > { %2368 = vmatprep.subr.bf16.mxu1 %v2693_v54 }
 0x482   : > { %2369 = vmatpush3.bf16.msra.mxu1 %v2694_v55 }
 0x4f9   : > { %v1351_v56 = vpop.f32.mrb[12].mxu1 }
 0x4fa   : > { %v2386_v57 = vpop.f32.mrb[13].mxu1  ;;  %v1357_v63 = vpack.c.bf16 %v1351_v56, %v1351_v56 }
 0x4fb   : > { %v1354_v58 = vpop.f32.mrb[14].mxu1 }
 0x4fc   : > { %v2387_v59 = vpop.f32.mrb[15].mxu1 }
 0x518   : > { %v1464_v60 = vpop.f32.mrb[16].mxu1 }
 0x519   : > { %v1470_v61 = vpack.c.bf16 %v1464_v60, %v1464_v60  ;;  %v2398_v62 = vpop.f32.mrb[17].mxu1 }
 0x51a   : > { %v1467_v1 = vpop.f32.mrb[18].mxu1 }
 0x51b   : > { %v2399_v2 = vpop.f32.mrb[19].mxu1  ;;  %1992 = vmatprep.mubr.bf16.mxu0 %v1470_v61 }
 0x51c   : > { %1993 = vmatmul.mubr.bf16.vlgmr.msra.gmra.mrb[28].mxu0 %v1357_v63 }
 0x520   : > { %v1577_v3 = vpop.f32.mrb[20].mxu1 }
 0x521   : > { %v2410_v4 = vpop.f32.mrb[21].mxu1  ;;  %v1583_v10 = vpack.c.bf16 %v1577_v3, %v1577_v3 }
 0x522   : > { %v1580_v5 = vpop.f32.mrb[22].mxu1 }
 0x523   : > { %v2411_v6 = vpop.f32.mrb[23].mxu1 }
 0x538   : > { %v1690_v8 = vpop.f32.mrb[24].mxu1 }
 0x539   : > { %v1696_v9 = vpack.c.bf16 %v1690_v8, %v1690_v8  ;;  %v2422_v37 = vpop.f32.mrb[25].mxu1 }
 0x53a   : > { %v1693_v42 = vpop.f32.mrb[26].mxu1 }
 0x53b   : > { %v2423_v7 = vpop.f32.mrb[27].mxu1  ;;  %2032 = vmatprep.mubr.bf16.mxu1 %v1696_v9 }
 0x53c   : > { %2033 = vmatmul.mubr.bf16.vlgmr.msra.gmra.mrb[28].mxu1 %v1583_v10 }
 0x5ef   : > { %v2348_v11 = vpop.f32.mrb[28].mxu0 }
 0x5f0   : > { %v2349_v12 = vpop.f32.mrb[29].mxu0 }
 0x5f1   : > { %v2350_v13 = vadd.f32 %v2349_v12, %v2348_v11  ;;  %v2351_v14 = vpop.f32.mrb[30].mxu0 }
 0x5f2   : > { %v2352_v15 = vpop.f32.mrb[31].mxu0 }
 0x5f3   : > { %v1995_v18 = vadd.f32 %v2350_v13, %v2279_v16 }
 0x60f   : > { %v2370_v17 = vpop.f32.mrb[28].mxu1 }
 0x610   : > { %v2371_v21 = vpop.f32.mrb[29].mxu1 }
 0x611   : > { %v2372_v19 = vadd.f32 %v2371_v21, %v2370_v17  ;;  %v2373_v20 = vpop.f32.mrb[30].mxu1 }
 0x612   : > { %v2374_v22 = vpop.f32.mrb[31].mxu1 }
 0x613   : > { %v2035_v23 = vadd.f32 %v2372_v19, %v1995_v18 }
 0x615   : > { %2040 = vst [vmem:[%s347_s17] sm:$0xff] %v2035_v23 }
 0x616   : > { %2866 = shalt.err (!%p2863_p0)
}
 0x617   : > { %s2867_s22 = scalar_lea.hbm %s3336_s11, 128  ;;  %s2871_s21 = scalar_lea.hbm %s3387_s7, 256 }
 0x618   : > { %p2868_p2 = scmp.ne.s32.totalorder %s3336_s11, %s2867_s22  ;;  %p2872_p10 = scmp.lt.u32.totalorder %s3336_s11, %s3387_s7 }
 0x619   : > { %p2873_p11 = scmp.lt.u32.totalorder %s2871_s21, %s2867_s22  ;;  %p2875_p6 = scmp.lt.u32.totalorder %s2867_s22, %s3336_s11 }
 0x61a   : > { %p2869_p8 = pnand %p2868_p2, %p3405_p5 }
 0x61b   : > { %p2874_p1 = por %p2873_p11, %p2872_p10 }
 0x61c   : > { %p2870_p4 = pneg %p2869_p8 }
 0x61d   : > { %p2876_p7 = por %p2875_p6, %p2874_p1 }
 0x61f   : > { %p2877_p9 = pnand %p2876_p7, %p2870_p4 }
 0x621   : > { %2880 = shalt.err (!%p2877_p9)
}
 0x622   : > { %2442 = dma.vmem_to_hbm [thread:$0]  (%p3405_p5), %s3338_s14, 128, %s3336_s11, %s2042_s16  }
 0x623 PF: > { %s2067_s15 = sand.u32 1, %s2915_s24   ;;  %p3406_p12 = scmp.ne.s32.totalorder %s3398_s12, 0 }
 0x624   : > { %p3407_p3 = scmp.ge.s32.totalorder %s2927_s27, 2  ;;  %s2068_s13 = scalar_lea.sflag [#allocation4], %s2067_s15 }
 0x626   : > { %p2462_p13 = pnand %p3407_p3, %p3406_p12 }
 0x628   : > { %2910 = dma.done.wait (!%p2462_p13), %s2068_s13, 128  }
 0x629   : > { %2912 = vsyncadd (!%p2462_p13), %s2068_s13, 4294967168  ;;  %p22_p0 = scmp.ge.s32.totalorder %s3123_s20, 4   ;;  %s3408_s24 = smov %s2919_s25 }
 0x62a   : > { %s3409_s25 = smov %s2923_s26  ;;  %s3410_s26 = smov %s3134_s23 }
 0x62b   : > { %s3411_s27 = smov %s3123_s20  ;;  %24 = sbr.rel (!%p22_p0) target bundleno = 7 (0x7), region = 109 }
 0x632   :  { %2073 = vsyncpa [#allocation3], 1 }
 0x633   :  { %2075 = vsyncpa [#allocation3 + $0x1], 1 }
 0x634   :  { %2076 = vsyncpa [#allocation6], 1 }
 0x635   :  { %2077 = vsyncpa [#allocation9], 1 }
 0x636   :  { %2078 = vsyncpa [#allocation4], 1 }
 0x637   :  { %2080 = vsyncpa [#allocation4 + $0x1], 1 }

</bundles_post_ra>
